<compile_context>
chip_gen: v7x
topology: tpu7x:2x2x1
jax: 0.10.0
libtpu: 0.0.40
codegen_flags: <defaults>
</compile_context>

<pallas_src>
import functools

import jax
import jax.numpy as jnp
import numpy as np
from jax.experimental import pallas as pl
from jax.experimental.pallas import tpu as pltpu

INPUT_SIZE = 9
CONV_OUT = 8
HIDDEN = 16
NUM_LAYERS = 2


def lstm_model_kernel(xflat_ref, slab_ref, out_ref, *, Bp, Tm1, off):
    H = HIDDEN
    G = 4 * H
    sl = slab_ref

    # ---- Static slab views (all row offsets are multiples of 8) ----
    cwc = sl[off["cwc"]:off["cwc"] + 2 * INPUT_SIZE, 0:CONV_OUT]        # (18, 8)
    cb = sl[off["cb"]:off["cb"] + 1, 0:CONV_OUT]                        # (1, 8)
    wih0 = sl[off["wih0"]:off["wih0"] + CONV_OUT, 0:G]                  # (8, 64)  pre-scaled
    b0 = sl[off["b0"]:off["b0"] + 1, 0:G]                               # (1, 64)  pre-scaled
    wih1 = sl[off["wih1"]:off["wih1"] + H, 0:G].astype(jnp.bfloat16)    # (16, 64) pre-scaled
    b1 = sl[off["b1"]:off["b1"] + 1, 0:G]                               # (1, 64)  pre-scaled
    whh0 = sl[off["whh0"]:off["whh0"] + H, 0:G].astype(jnp.bfloat16)    # (16, 64) pre-scaled
    whh1 = sl[off["whh1"]:off["whh1"] + H, 0:G].astype(jnp.bfloat16)    # (16, 64) pre-scaled
    d1w = sl[off["d1w"]:off["d1w"] + H, 0:6]                            # (16, 6)
    d1b = sl[off["d1b"]:off["d1b"] + 1, 0:6]                            # (1, 6)
    d2w = sl[off["d2w"]:off["d2w"] + 6, 0:1]                            # (6, 1)
    d2b = sl[off["d2b"]:off["d2b"] + 1, 0:1]                            # (1, 1)

    h_l0 = sl[off["h00"]:off["h00"] + Bp, 0:H]                          # (Bp, 16)
    h_l1 = sl[off["h01"]:off["h01"] + Bp, 0:H]
    c_l0 = sl[off["c00"]:off["c00"] + Bp, 0:H]
    c_l1 = sl[off["c01"]:off["c01"] + Bp, 0:H]

    # ---- Hoisted, state-independent work (one pass over all timesteps) ----
    # Conv1d(9->8, k=2) + ReLU as one matmul over the stacked taps, then the
    # layer-0 input projection (+ b0, both already 0.5-pre-scaled on i/f/o).
    xflat = xflat_ref[...]                                              # (Tm1*Bp, 18)
    conv = jnp.dot(xflat, cwc, preferred_element_type=jnp.float32) + cb
    conv = jnp.maximum(conv, 0.0)                                       # (Tm1*Bp, 8)
    proj0 = jnp.dot(conv, wih0, preferred_element_type=jnp.float32) + b0  # (Tm1*Bp, 64)

    # Lane mask selecting the tanh (g) gate columns, built once.
    lane = jax.lax.broadcasted_iota(jnp.int32, (Bp, G), 1)
    g_mask = (lane >= 2 * H) & (lane < 3 * H)

    def gate_act(gates, c_prev):
        # i/f/o columns arrive pre-scaled by 0.5 (folded into the weights), so
        # a single whole-vreg tanh + one select recovers sigmoid vs tanh.
        th = jnp.tanh(gates)
        act = jnp.where(g_mask, th, 0.5 * th + 0.5)                     # (Bp, 64)
        i = act[:, 0 * H:1 * H]
        f = act[:, 1 * H:2 * H]
        g = act[:, 2 * H:3 * H]
        o = act[:, 3 * H:4 * H]
        c_new = f * c_prev + i * g
        h_new = o * jnp.tanh(c_new)
        return h_new, c_new

    # ---- Serial recurrence: only chain-dependent work stays in the loop ----
    # T is small (<=16) so a static unrolled loop is fine; switch to
    # lax.fori_loop(unroll=True) with a VMEM proj0 scratch if T grows.
    for t in range(Tm1):
        # rec1 depends only on the *previous* h_l1, so it is independent of
        # layer-0's step-t work and can be scheduled under it.
        rec1 = jnp.dot(h_l1.astype(jnp.bfloat16), whh1,
                       preferred_element_type=jnp.float32)              # (Bp, 64)
        rec0 = jnp.dot(h_l0.astype(jnp.bfloat16), whh0,
                       preferred_element_type=jnp.float32)              # (Bp, 64)

        gates0 = proj0[t * Bp:(t + 1) * Bp, :] + rec0
        h_l0, c_l0 = gate_act(gates0, c_l0)

        inp1 = jnp.dot(h_l0.astype(jnp.bfloat16), wih1,
                       preferred_element_type=jnp.float32)              # (Bp, 64)
        gates1 = inp1 + rec1 + b1
        h_l1, c_l1 = gate_act(gates1, c_l1)

    # r_out[:, -1, :] == top-layer hidden state after the last timestep.
    # Dense head: Dropout(0.5) -> Linear(16, 6) -> ReLU -> Linear(6, 1)
    # TODO(synk): Dropout(0.5) treated as identity (inference semantics).
    z = jnp.dot(h_l1, d1w, preferred_element_type=jnp.float32) + d1b
    z = jnp.maximum(z, 0.0)                                             # (Bp, 6)
    out = jnp.dot(z, d2w, preferred_element_type=jnp.float32) + d2b
    out_ref[...] = out.astype(out_ref.dtype)                            # (Bp, 1)


def pack_params(params, batch):
    """One-time parameter packing: fold the 0.5 sigmoid pre-scale into the
    i/f/o gate columns and pack every operand into a single sublane-aligned
    (rows, 128) f32 slab."""
    (cw0, cw1, cb, wih0, whh0, b0, wih1, whh1, b1, h0, c0,
     d1w, d1b, d2w, d2b) = params
    H = HIDDEN
    Bp = max(8, -(-batch // 8) * 8)

    cols = np.arange(4 * H)
    scale = jnp.asarray(
        np.where((cols >= 2 * H) & (cols < 3 * H), 1.0, 0.5), jnp.float32)

    cwc = jnp.concatenate([cw0, cw1], axis=0)                           # (18, 8)
    h0p = jnp.pad(h0, ((0, 0), (0, Bp - batch), (0, 0)))
    c0p = jnp.pad(c0, ((0, 0), (0, Bp - batch), (0, 0)))

    pieces = {
        "cwc": cwc,
        "cb": cb,
        "wih0": wih0 * scale,
        "b0": b0 * scale,
        "wih1": wih1 * scale,
        "b1": b1 * scale,
        "whh0": whh0 * scale,
        "whh1": whh1 * scale,
        "h00": h0p[0],
        "h01": h0p[1],
        "c00": c0p[0],
        "c01": c0p[1],
        "d1w": d1w,
        "d1b": d1b,
        "d2w": d2w,
        "d2b": d2b,
    }

    off = {}
    rows = 0
    for name, a in pieces.items():
        off[name] = rows
        rows += -(-a.shape[0] // 8) * 8                                 # pad to sublane group

    slab = jnp.zeros((rows, 128), jnp.float32)
    for name, a in pieces.items():
        slab = slab.at[off[name]:off[name] + a.shape[0], :a.shape[1]].set(
            a.astype(jnp.float32))
    return slab, off, Bp


def lstm_forward(x, slab, off, Bp):
    B, T, C = x.shape
    Tm1 = T - 1

    # Per-call input packing only (weights already packed once):
    # time-major paired conv taps, flattened to (Tm1*Bp, 2C).
    xpad = jnp.pad(x, ((0, Bp - B), (0, 0), (0, 0)))
    xt = jnp.transpose(xpad, (1, 0, 2))                                 # (T, Bp, 9)
    xflat = jnp.concatenate([xt[:-1], xt[1:]], axis=-1).reshape(Tm1 * Bp, 2 * C)

    kernel = functools.partial(lstm_model_kernel, Bp=Bp, Tm1=Tm1, off=off)
    out = pl.pallas_call(
        kernel,
        out_shape=jax.ShapeDtypeStruct((Bp, 1), jnp.float32),
        in_specs=[pl.BlockSpec(memory_space=pltpu.MemorySpace.VMEM),
                  pl.BlockSpec(memory_space=pltpu.MemorySpace.VMEM)],
        out_specs=pl.BlockSpec(memory_space=pltpu.MemorySpace.VMEM),
    )(xflat, slab)
    return out[:B]


def reference_forward(x, params):
    """Pure-JAX reference mirroring the PyTorch forward (dropout as identity)."""
    (cw0, cw1, cb, wih0, whh0, b0, wih1, whh1, b1, h0, c0,
     d1w, d1b, d2w, d2b) = params
    B, T, _ = x.shape
    h_l0, c_l0 = h0[0], c0[0]
    h_l1, c_l1 = h0[1], c0[1]

    def cell(xt, h, c, wih, whh, b):
        H = h.shape[-1]
        g = xt @ wih + h @ whh + b
        i = jax.nn.sigmoid(g[:, :H])
        f = jax.nn.sigmoid(g[:, H:2 * H])
        gg = jnp.tanh(g[:, 2 * H:3 * H])
        o = jax.nn.sigmoid(g[:, 3 * H:])
        c = f * c + i * gg
        return o * jnp.tanh(c), c

    for t in range(T - 1):
        xt = jnp.maximum(x[:, t, :] @ cw0 + x[:, t + 1, :] @ cw1 + cb, 0.0)
        h_l0, c_l0 = cell(xt, h_l0, c_l0, wih0, whh0, b0)
        h_l1, c_l1 = cell(h_l0, h_l1, c_l1, wih1, whh1, b1)
    z = jnp.maximum(h_l1 @ d1w + d1b, 0.0)
    return z @ d2w + d2b


def make_params(key, batch):
    ks = jax.random.split(key, 12)

    def uni(k, shape, fan_in):
        bound = 1.0 / np.sqrt(fan_in)
        return jax.random.uniform(k, shape, jnp.float32, -bound, bound)

    # Conv1d(9, 8, kernel_size=2): torch weight (8, 9, 2), bias (8,)
    conv_w = uni(ks[0], (CONV_OUT, INPUT_SIZE, 2), INPUT_SIZE * 2)
    cw0 = jnp.transpose(conv_w[:, :, 0])                    # (9, 8)
    cw1 = jnp.transpose(conv_w[:, :, 1])                    # (9, 8)
    cb = uni(ks[1], (1, CONV_OUT), INPUT_SIZE * 2)          # (1, 8)

    # LSTM layer 0: weight_ih (64, 8), weight_hh (64, 16), biases (64,) each
    wih0 = jnp.transpose(uni(ks[2], (4 * HIDDEN, CONV_OUT), HIDDEN))   # (8, 64)
    whh0 = jnp.transpose(uni(ks[3], (4 * HIDDEN, HIDDEN), HIDDEN))     # (16, 64)
    b0 = (uni(ks[4], (4 * HIDDEN,), HIDDEN)
          + uni(ks[5], (4 * HIDDEN,), HIDDEN)).reshape(1, 4 * HIDDEN)

    # LSTM layer 1: weight_ih (64, 16), weight_hh (64, 16)
    wih1 = jnp.transpose(uni(ks[6], (4 * HIDDEN, HIDDEN), HIDDEN))     # (16, 64)
    whh1 = jnp.transpose(uni(ks[7], (4 * HIDDEN, HIDDEN), HIDDEN))     # (16, 64)
    b1 = (uni(ks[8], (4 * HIDDEN,), HIDDEN)
          + uni(ks[9], (4 * HIDDEN,), HIDDEN)).reshape(1, 4 * HIDDEN)

    # h0 = c0 = randn(2, B, 16) in the reference forward (same tensor).
    h0 = jax.random.normal(ks[10], (NUM_LAYERS, batch, HIDDEN), jnp.float32)
    c0 = h0

    # Dense head: Linear(16, 6), Linear(6, 1)
    dk = jax.random.split(ks[11], 4)
    d1w = jnp.transpose(uni(dk[0], (6, HIDDEN), HIDDEN))    # (16, 6)
    d1b = uni(dk[1], (1, 6), HIDDEN)
    d2w = jnp.transpose(uni(dk[2], (1, 6), 6))              # (6, 1)
    d2b = uni(dk[3], (1, 1), 6)

    return (cw0, cw1, cb, wih0, whh0, b0, wih1, whh1, b1, h0, c0,
            d1w, d1b, d2w, d2b)


if __name__ == "__main__":
    key = jax.random.PRNGKey(0)
    kx, kp = jax.random.split(key)

    B, T = 2, 8
    x = jax.random.normal(kx, (B, T, INPUT_SIZE), jnp.float32)
    params = make_params(kp, B)

    # One-time packing (prescale fold + slab build), then the per-call kernel.
    slab, off, Bp = pack_params(params, B)

    out = lstm_forward(x, slab, off, Bp)
    out = jax.block_until_ready(out)
    assert out.shape == (B, 1), out.shape

    ref = jax.block_until_ready(reference_forward(x, params))
    # bf16 MXU operands on the recurrent chain perturb numerics slightly
    # (review-approved); accumulation and all elementwise math remain f32.
    assert np.allclose(np.asarray(out), np.asarray(ref), atol=2e-2, rtol=2e-2), (
        "kernel/reference mismatch", np.asarray(out), np.asarray(ref))

    print("KERNEL_OK")
</pallas_src>

<mosaic_0001>
module attributes {stable_mosaic.version = 11 : i64} {
  func.func @lstm_model_kernel(%arg0: memref<56x18xf32, #tpu.memory_space<vmem>>, %arg1: memref<176x128xf32, #tpu.memory_space<vmem>>, %arg2: memref<8x1xf32, #tpu.memory_space<vmem>>) attributes {dimension_semantics = [], scalar_prefetch = 0 : i64, scratch_operands = 0 : i64, tpu.core_type = #tpu.core_type<tc>} {
    %c0 = arith.constant 0 : index
    %c0_0 = arith.constant 0 : index
    %0 = vector.load %arg1[%c0, %c0_0] : memref<176x128xf32, #tpu.memory_space<vmem>>, vector<18x8xf32>
    %c24 = arith.constant 24 : index
    %c0_1 = arith.constant 0 : index
    %1 = vector.load %arg1[%c24, %c0_1] : memref<176x128xf32, #tpu.memory_space<vmem>>, vector<1x8xf32>
    %c32 = arith.constant 32 : index
    %c0_2 = arith.constant 0 : index
    %2 = vector.load %arg1[%c32, %c0_2] : memref<176x128xf32, #tpu.memory_space<vmem>>, vector<8x64xf32>
    %c40 = arith.constant 40 : index
    %c0_3 = arith.constant 0 : index
    %3 = vector.load %arg1[%c40, %c0_3] : memref<176x128xf32, #tpu.memory_space<vmem>>, vector<1x64xf32>
    %c48 = arith.constant 48 : index
    %c0_4 = arith.constant 0 : index
    %4 = vector.load %arg1[%c48, %c0_4] : memref<176x128xf32, #tpu.memory_space<vmem>>, vector<16x64xf32>
    %5 = arith.truncf %4 : vector<16x64xf32> to vector<16x64xbf16>
    %c64 = arith.constant 64 : index
    %c0_5 = arith.constant 0 : index
    %6 = vector.load %arg1[%c64, %c0_5] : memref<176x128xf32, #tpu.memory_space<vmem>>, vector<1x64xf32>
    %c72 = arith.constant 72 : index
    %c0_6 = arith.constant 0 : index
    %7 = vector.load %arg1[%c72, %c0_6] : memref<176x128xf32, #tpu.memory_space<vmem>>, vector<16x64xf32>
    %8 = arith.truncf %7 : vector<16x64xf32> to vector<16x64xbf16>
    %c88 = arith.constant 88 : index
    %c0_7 = arith.constant 0 : index
    %9 = vector.load %arg1[%c88, %c0_7] : memref<176x128xf32, #tpu.memory_space<vmem>>, vector<16x64xf32>
    %10 = arith.truncf %9 : vector<16x64xf32> to vector<16x64xbf16>
    %c136 = arith.constant 136 : index
    %c0_8 = arith.constant 0 : index
    %11 = vector.load %arg1[%c136, %c0_8] : memref<176x128xf32, #tpu.memory_space<vmem>>, vector<16x6xf32>
    %c152 = arith.constant 152 : index
    %c0_9 = arith.constant 0 : index
    %12 = vector.load %arg1[%c152, %c0_9] : memref<176x128xf32, #tpu.memory_space<vmem>>, vector<1x6xf32>
    %c160 = arith.constant 160 : index
    %c0_10 = arith.constant 0 : index
    %13 = vector.load %arg1[%c160, %c0_10] : memref<176x128xf32, #tpu.memory_space<vmem>>, vector<6x1xf32>
    %c168 = arith.constant 168 : index
    %c0_11 = arith.constant 0 : index
    %14 = vector.load %arg1[%c168, %c0_11] : memref<176x128xf32, #tpu.memory_space<vmem>>, vector<1x1xf32>
    %c104 = arith.constant 104 : index
    %c0_12 = arith.constant 0 : index
    %15 = vector.load %arg1[%c104, %c0_12] : memref<176x128xf32, #tpu.memory_space<vmem>>, vector<8x16xf32>
    %c112 = arith.constant 112 : index
    %c0_13 = arith.constant 0 : index
    %16 = vector.load %arg1[%c112, %c0_13] : memref<176x128xf32, #tpu.memory_space<vmem>>, vector<8x16xf32>
    %c120 = arith.constant 120 : index
    %c0_14 = arith.constant 0 : index
    %17 = vector.load %arg1[%c120, %c0_14] : memref<176x128xf32, #tpu.memory_space<vmem>>, vector<8x16xf32>
    %c128 = arith.constant 128 : index
    %c0_15 = arith.constant 0 : index
    %18 = vector.load %arg1[%c128, %c0_15] : memref<176x128xf32, #tpu.memory_space<vmem>>, vector<8x16xf32>
    %c0_16 = arith.constant 0 : index
    %c0_17 = arith.constant 0 : index
    %19 = vector.load %arg0[%c0_16, %c0_17] : memref<56x18xf32, #tpu.memory_space<vmem>>, vector<56x18xf32>
    %cst = arith.constant dense<0.000000e+00> : vector<56x8xf32>
    %20 = tpu.matmul %19, %0, %cst {dimension_numbers = #tpu.dot_dimension_numbers<[1], [0], [0], [1], [0, 0, 1, 1], [], []>} : vector<56x18xf32>, vector<18x8xf32>, vector<56x8xf32> -> vector<56x8xf32>
    %21 = vector.broadcast %1 : vector<1x8xf32> to vector<56x8xf32>
    %22 = arith.addf %20, %21 : vector<56x8xf32>
    %cst_18 = arith.constant 0.000000e+00 : f32
    %23 = vector.broadcast %cst_18 : f32 to vector<56x8xf32>
    %24 = arith.maximumf %22, %23 : vector<56x8xf32>
    %cst_19 = arith.constant dense<0.000000e+00> : vector<56x64xf32>
    %25 = tpu.matmul %24, %2, %cst_19 {dimension_numbers = #tpu.dot_dimension_numbers<[1], [0], [0], [1], [0, 0, 1, 1], [], []>} : vector<56x8xf32>, vector<8x64xf32>, vector<56x64xf32> -> vector<56x64xf32>
    %26 = vector.broadcast %3 : vector<1x64xf32> to vector<56x64xf32>
    %27 = arith.addf %25, %26 : vector<56x64xf32>
    %28 = tpu.iota {dimensions = array<i32: 1>} : vector<8x64xi32>
    %c32_i32 = arith.constant 32 : i32
    %29 = vector.broadcast %c32_i32 : i32 to vector<8x64xi32>
    %30 = arith.cmpi sge, %28, %29 : vector<8x64xi32>
    %c48_i32 = arith.constant 48 : i32
    %31 = vector.broadcast %c48_i32 : i32 to vector<8x64xi32>
    %32 = arith.cmpi slt, %28, %31 : vector<8x64xi32>
    %33 = arith.andi %30, %32 : vector<8x64xi1>
    %34 = arith.truncf %16 : vector<8x16xf32> to vector<8x16xbf16>
    %cst_20 = arith.constant dense<0.000000e+00> : vector<8x64xf32>
    %35 = tpu.matmul %34, %10, %cst_20 {dimension_numbers = #tpu.dot_dimension_numbers<[1], [0], [0], [1], [0, 0, 1, 1], [], []>} : vector<8x16xbf16>, vector<16x64xbf16>, vector<8x64xf32> -> vector<8x64xf32>
    %36 = arith.truncf %15 : vector<8x16xf32> to vector<8x16xbf16>
    %cst_21 = arith.constant dense<0.000000e+00> : vector<8x64xf32>
    %37 = tpu.matmul %36, %8, %cst_21 {dimension_numbers = #tpu.dot_dimension_numbers<[1], [0], [0], [1], [0, 0, 1, 1], [], []>} : vector<8x16xbf16>, vector<16x64xbf16>, vector<8x64xf32> -> vector<8x64xf32>
    %38 = vector.extract_strided_slice %27 {offsets = [0, 0], sizes = [8, 64], strides = [1, 1]} : vector<56x64xf32> to vector<8x64xf32>
    %39 = arith.addf %38, %37 : vector<8x64xf32>
    %40 = math.tanh %39 : vector<8x64xf32>
    %cst_22 = arith.constant 5.000000e-01 : f32
    %41 = vector.broadcast %cst_22 : f32 to vector<8x64xf32>
    %42 = arith.mulf %41, %40 : vector<8x64xf32>
    %cst_23 = arith.constant 5.000000e-01 : f32
    %43 = vector.broadcast %cst_23 : f32 to vector<8x64xf32>
    %44 = arith.addf %42, %43 : vector<8x64xf32>
    %45 = arith.select %33, %40, %44 : vector<8x64xi1>, vector<8x64xf32>
    %46 = vector.extract_strided_slice %45 {offsets = [0, 0], sizes = [8, 16], strides = [1, 1]} : vector<8x64xf32> to vector<8x16xf32>
    %47 = vector.extract_strided_slice %45 {offsets = [0, 16], sizes = [8, 16], strides = [1, 1]} : vector<8x64xf32> to vector<8x16xf32>
    %48 = vector.extract_strided_slice %45 {offsets = [0, 32], sizes = [8, 16], strides = [1, 1]} : vector<8x64xf32> to vector<8x16xf32>
    %49 = vector.extract_strided_slice %45 {offsets = [0, 48], sizes = [8, 16], strides = [1, 1]} : vector<8x64xf32> to vector<8x16xf32>
    %50 = arith.mulf %47, %17 : vector<8x16xf32>
    %51 = arith.mulf %46, %48 : vector<8x16xf32>
    %52 = arith.addf %50, %51 : vector<8x16xf32>
    %53 = math.tanh %52 : vector<8x16xf32>
    %54 = arith.mulf %49, %53 : vector<8x16xf32>
    %55 = arith.truncf %54 : vector<8x16xf32> to vector<8x16xbf16>
    %cst_24 = arith.constant dense<0.000000e+00> : vector<8x64xf32>
    %56 = tpu.matmul %55, %5, %cst_24 {dimension_numbers = #tpu.dot_dimension_numbers<[1], [0], [0], [1], [0, 0, 1, 1], [], []>} : vector<8x16xbf16>, vector<16x64xbf16>, vector<8x64xf32> -> vector<8x64xf32>
    %57 = arith.addf %56, %35 : vector<8x64xf32>
    %58 = vector.broadcast %6 : vector<1x64xf32> to vector<8x64xf32>
    %59 = arith.addf %57, %58 : vector<8x64xf32>
    %60 = math.tanh %59 : vector<8x64xf32>
    %cst_25 = arith.constant 5.000000e-01 : f32
    %61 = vector.broadcast %cst_25 : f32 to vector<8x64xf32>
    %62 = arith.mulf %61, %60 : vector<8x64xf32>
    %cst_26 = arith.constant 5.000000e-01 : f32
    %63 = vector.broadcast %cst_26 : f32 to vector<8x64xf32>
    %64 = arith.addf %62, %63 : vector<8x64xf32>
    %65 = arith.select %33, %60, %64 : vector<8x64xi1>, vector<8x64xf32>
    %66 = vector.extract_strided_slice %65 {offsets = [0, 0], sizes = [8, 16], strides = [1, 1]} : vector<8x64xf32> to vector<8x16xf32>
    %67 = vector.extract_strided_slice %65 {offsets = [0, 16], sizes = [8, 16], strides = [1, 1]} : vector<8x64xf32> to vector<8x16xf32>
    %68 = vector.extract_strided_slice %65 {offsets = [0, 32], sizes = [8, 16], strides = [1, 1]} : vector<8x64xf32> to vector<8x16xf32>
    %69 = vector.extract_strided_slice %65 {offsets = [0, 48], sizes = [8, 16], strides = [1, 1]} : vector<8x64xf32> to vector<8x16xf32>
    %70 = arith.mulf %67, %18 : vector<8x16xf32>
    %71 = arith.mulf %66, %68 : vector<8x16xf32>
    %72 = arith.addf %70, %71 : vector<8x16xf32>
    %73 = math.tanh %72 : vector<8x16xf32>
    %74 = arith.mulf %69, %73 : vector<8x16xf32>
    %75 = arith.truncf %74 : vector<8x16xf32> to vector<8x16xbf16>
    %cst_27 = arith.constant dense<0.000000e+00> : vector<8x64xf32>
    %76 = tpu.matmul %75, %10, %cst_27 {dimension_numbers = #tpu.dot_dimension_numbers<[1], [0], [0], [1], [0, 0, 1, 1], [], []>} : vector<8x16xbf16>, vector<16x64xbf16>, vector<8x64xf32> -> vector<8x64xf32>
    %77 = arith.truncf %54 : vector<8x16xf32> to vector<8x16xbf16>
    %cst_28 = arith.constant dense<0.000000e+00> : vector<8x64xf32>
    %78 = tpu.matmul %77, %8, %cst_28 {dimension_numbers = #tpu.dot_dimension_numbers<[1], [0], [0], [1], [0, 0, 1, 1], [], []>} : vector<8x16xbf16>, vector<16x64xbf16>, vector<8x64xf32> -> vector<8x64xf32>
    %79 = vector.extract_strided_slice %27 {offsets = [8, 0], sizes = [8, 64], strides = [1, 1]} : vector<56x64xf32> to vector<8x64xf32>
    %80 = arith.addf %79, %78 : vector<8x64xf32>
    %81 = math.tanh %80 : vector<8x64xf32>
    %cst_29 = arith.constant 5.000000e-01 : f32
    %82 = vector.broadcast %cst_29 : f32 to vector<8x64xf32>
    %83 = arith.mulf %82, %81 : vector<8x64xf32>
    %cst_30 = arith.constant 5.000000e-01 : f32
    %84 = vector.broadcast %cst_30 : f32 to vector<8x64xf32>
    %85 = arith.addf %83, %84 : vector<8x64xf32>
    %86 = arith.select %33, %81, %85 : vector<8x64xi1>, vector<8x64xf32>
    %87 = vector.extract_strided_slice %86 {offsets = [0, 0], sizes = [8, 16], strides = [1, 1]} : vector<8x64xf32> to vector<8x16xf32>
    %88 = vector.extract_strided_slice %86 {offsets = [0, 16], sizes = [8, 16], strides = [1, 1]} : vector<8x64xf32> to vector<8x16xf32>
    %89 = vector.extract_strided_slice %86 {offsets = [0, 32], sizes = [8, 16], strides = [1, 1]} : vector<8x64xf32> to vector<8x16xf32>
    %90 = vector.extract_strided_slice %86 {offsets = [0, 48], sizes = [8, 16], strides = [1, 1]} : vector<8x64xf32> to vector<8x16xf32>
    %91 = arith.mulf %88, %52 : vector<8x16xf32>
    %92 = arith.mulf %87, %89 : vector<8x16xf32>
    %93 = arith.addf %91, %92 : vector<8x16xf32>
    %94 = math.tanh %93 : vector<8x16xf32>
    %95 = arith.mulf %90, %94 : vector<8x16xf32>
    %96 = arith.truncf %95 : vector<8x16xf32> to vector<8x16xbf16>
    %cst_31 = arith.constant dense<0.000000e+00> : vector<8x64xf32>
    %97 = tpu.matmul %96, %5, %cst_31 {dimension_numbers = #tpu.dot_dimension_numbers<[1], [0], [0], [1], [0, 0, 1, 1], [], []>} : vector<8x16xbf16>, vector<16x64xbf16>, vector<8x64xf32> -> vector<8x64xf32>
    %98 = arith.addf %97, %76 : vector<8x64xf32>
    %99 = vector.broadcast %6 : vector<1x64xf32> to vector<8x64xf32>
    %100 = arith.addf %98, %99 : vector<8x64xf32>
    %101 = math.tanh %100 : vector<8x64xf32>
    %cst_32 = arith.constant 5.000000e-01 : f32
    %102 = vector.broadcast %cst_32 : f32 to vector<8x64xf32>
    %103 = arith.mulf %102, %101 : vector<8x64xf32>
    %cst_33 = arith.constant 5.000000e-01 : f32
    %104 = vector.broadcast %cst_33 : f32 to vector<8x64xf32>
    %105 = arith.addf %103, %104 : vector<8x64xf32>
    %106 = arith.select %33, %101, %105 : vector<8x64xi1>, vector<8x64xf32>
    %107 = vector.extract_strided_slice %106 {offsets = [0, 0], sizes = [8, 16], strides = [1, 1]} : vector<8x64xf32> to vector<8x16xf32>
    %108 = vector.extract_strided_slice %106 {offsets = [0, 16], sizes = [8, 16], strides = [1, 1]} : vector<8x64xf32> to vector<8x16xf32>
    %109 = vector.extract_strided_slice %106 {offsets = [0, 32], sizes = [8, 16], strides = [1, 1]} : vector<8x64xf32> to vector<8x16xf32>
    %110 = vector.extract_strided_slice %106 {offsets = [0, 48], sizes = [8, 16], strides = [1, 1]} : vector<8x64xf32> to vector<8x16xf32>
    %111 = arith.mulf %108, %72 : vector<8x16xf32>
    %112 = arith.mulf %107, %109 : vector<8x16xf32>
    %113 = arith.addf %111, %112 : vector<8x16xf32>
    %114 = math.tanh %113 : vector<8x16xf32>
    %115 = arith.mulf %110, %114 : vector<8x16xf32>
    %116 = arith.truncf %115 : vector<8x16xf32> to vector<8x16xbf16>
    %cst_34 = arith.constant dense<0.000000e+00> : vector<8x64xf32>
    %117 = tpu.matmul %116, %10, %cst_34 {dimension_numbers = #tpu.dot_dimension_numbers<[1], [0], [0], [1], [0, 0, 1, 1], [], []>} : vector<8x16xbf16>, vector<16x64xbf16>, vector<8x64xf32> -> vector<8x64xf32>
    %118 = arith.truncf %95 : vector<8x16xf32> to vector<8x16xbf16>
    %cst_35 = arith.constant dense<0.000000e+00> : vector<8x64xf32>
    %119 = tpu.matmul %118, %8, %cst_35 {dimension_numbers = #tpu.dot_dimension_numbers<[1], [0], [0], [1], [0, 0, 1, 1], [], []>} : vector<8x16xbf16>, vector<16x64xbf16>, vector<8x64xf32> -> vector<8x64xf32>
    %120 = vector.extract_strided_slice %27 {offsets = [16, 0], sizes = [8, 64], strides = [1, 1]} : vector<56x64xf32> to vector<8x64xf32>
    %121 = arith.addf %120, %119 : vector<8x64xf32>
    %122 = math.tanh %121 : vector<8x64xf32>
    %cst_36 = arith.constant 5.000000e-01 : f32
    %123 = vector.broadcast %cst_36 : f32 to vector<8x64xf32>
    %124 = arith.mulf %123, %122 : vector<8x64xf32>
    %cst_37 = arith.constant 5.000000e-01 : f32
    %125 = vector.broadcast %cst_37 : f32 to vector<8x64xf32>
    %126 = arith.addf %124, %125 : vector<8x64xf32>
    %127 = arith.select %33, %122, %126 : vector<8x64xi1>, vector<8x64xf32>
    %128 = vector.extract_strided_slice %127 {offsets = [0, 0], sizes = [8, 16], strides = [1, 1]} : vector<8x64xf32> to vector<8x16xf32>
    %129 = vector.extract_strided_slice %127 {offsets = [0, 16], sizes = [8, 16], strides = [1, 1]} : vector<8x64xf32> to vector<8x16xf32>
    %130 = vector.extract_strided_slice %127 {offsets = [0, 32], sizes = [8, 16], strides = [1, 1]} : vector<8x64xf32> to vector<8x16xf32>
    %131 = vector.extract_strided_slice %127 {offsets = [0, 48], sizes = [8, 16], strides = [1, 1]} : vector<8x64xf32> to vector<8x16xf32>
    %132 = arith.mulf %129, %93 : vector<8x16xf32>
    %133 = arith.mulf %128, %130 : vector<8x16xf32>
    %134 = arith.addf %132, %133 : vector<8x16xf32>
    %135 = math.tanh %134 : vector<8x16xf32>
    %136 = arith.mulf %131, %135 : vector<8x16xf32>
    %137 = arith.truncf %136 : vector<8x16xf32> to vector<8x16xbf16>
    %cst_38 = arith.constant dense<0.000000e+00> : vector<8x64xf32>
    %138 = tpu.matmul %137, %5, %cst_38 {dimension_numbers = #tpu.dot_dimension_numbers<[1], [0], [0], [1], [0, 0, 1, 1], [], []>} : vector<8x16xbf16>, vector<16x64xbf16>, vector<8x64xf32> -> vector<8x64xf32>
    %139 = arith.addf %138, %117 : vector<8x64xf32>
    %140 = vector.broadcast %6 : vector<1x64xf32> to vector<8x64xf32>
    %141 = arith.addf %139, %140 : vector<8x64xf32>
    %142 = math.tanh %141 : vector<8x64xf32>
    %cst_39 = arith.constant 5.000000e-01 : f32
    %143 = vector.broadcast %cst_39 : f32 to vector<8x64xf32>
    %144 = arith.mulf %143, %142 : vector<8x64xf32>
    %cst_40 = arith.constant 5.000000e-01 : f32
    %145 = vector.broadcast %cst_40 : f32 to vector<8x64xf32>
    %146 = arith.addf %144, %145 : vector<8x64xf32>
    %147 = arith.select %33, %142, %146 : vector<8x64xi1>, vector<8x64xf32>
    %148 = vector.extract_strided_slice %147 {offsets = [0, 0], sizes = [8, 16], strides = [1, 1]} : vector<8x64xf32> to vector<8x16xf32>
    %149 = vector.extract_strided_slice %147 {offsets = [0, 16], sizes = [8, 16], strides = [1, 1]} : vector<8x64xf32> to vector<8x16xf32>
    %150 = vector.extract_strided_slice %147 {offsets = [0, 32], sizes = [8, 16], strides = [1, 1]} : vector<8x64xf32> to vector<8x16xf32>
    %151 = vector.extract_strided_slice %147 {offsets = [0, 48], sizes = [8, 16], strides = [1, 1]} : vector<8x64xf32> to vector<8x16xf32>
    %152 = arith.mulf %149, %113 : vector<8x16xf32>
    %153 = arith.mulf %148, %150 : vector<8x16xf32>
    %154 = arith.addf %152, %153 : vector<8x16xf32>
    %155 = math.tanh %154 : vector<8x16xf32>
    %156 = arith.mulf %151, %155 : vector<8x16xf32>
    %157 = arith.truncf %156 : vector<8x16xf32> to vector<8x16xbf16>
    %cst_41 = arith.constant dense<0.000000e+00> : vector<8x64xf32>
    %158 = tpu.matmul %157, %10, %cst_41 {dimension_numbers = #tpu.dot_dimension_numbers<[1], [0], [0], [1], [0, 0, 1, 1], [], []>} : vector<8x16xbf16>, vector<16x64xbf16>, vector<8x64xf32> -> vector<8x64xf32>
    %159 = arith.truncf %136 : vector<8x16xf32> to vector<8x16xbf16>
    %cst_42 = arith.constant dense<0.000000e+00> : vector<8x64xf32>
    %160 = tpu.matmul %159, %8, %cst_42 {dimension_numbers = #tpu.dot_dimension_numbers<[1], [0], [0], [1], [0, 0, 1, 1], [], []>} : vector<8x16xbf16>, vector<16x64xbf16>, vector<8x64xf32> -> vector<8x64xf32>
    %161 = vector.extract_strided_slice %27 {offsets = [24, 0], sizes = [8, 64], strides = [1, 1]} : vector<56x64xf32> to vector<8x64xf32>
    %162 = arith.addf %161, %160 : vector<8x64xf32>
    %163 = math.tanh %162 : vector<8x64xf32>
    %cst_43 = arith.constant 5.000000e-01 : f32
    %164 = vector.broadcast %cst_43 : f32 to vector<8x64xf32>
    %165 = arith.mulf %164, %163 : vector<8x64xf32>
    %cst_44 = arith.constant 5.000000e-01 : f32
    %166 = vector.broadcast %cst_44 : f32 to vector<8x64xf32>
    %167 = arith.addf %165, %166 : vector<8x64xf32>
    %168 = arith.select %33, %163, %167 : vector<8x64xi1>, vector<8x64xf32>
    %169 = vector.extract_strided_slice %168 {offsets = [0, 0], sizes = [8, 16], strides = [1, 1]} : vector<8x64xf32> to vector<8x16xf32>
    %170 = vector.extract_strided_slice %168 {offsets = [0, 16], sizes = [8, 16], strides = [1, 1]} : vector<8x64xf32> to vector<8x16xf32>
    %171 = vector.extract_strided_slice %168 {offsets = [0, 32], sizes = [8, 16], strides = [1, 1]} : vector<8x64xf32> to vector<8x16xf32>
    %172 = vector.extract_strided_slice %168 {offsets = [0, 48], sizes = [8, 16], strides = [1, 1]} : vector<8x64xf32> to vector<8x16xf32>
    %173 = arith.mulf %170, %134 : vector<8x16xf32>
    %174 = arith.mulf %169, %171 : vector<8x16xf32>
    %175 = arith.addf %173, %174 : vector<8x16xf32>
    %176 = math.tanh %175 : vector<8x16xf32>
    %177 = arith.mulf %172, %176 : vector<8x16xf32>
    %178 = arith.truncf %177 : vector<8x16xf32> to vector<8x16xbf16>
    %cst_45 = arith.constant dense<0.000000e+00> : vector<8x64xf32>
    %179 = tpu.matmul %178, %5, %cst_45 {dimension_numbers = #tpu.dot_dimension_numbers<[1], [0], [0], [1], [0, 0, 1, 1], [], []>} : vector<8x16xbf16>, vector<16x64xbf16>, vector<8x64xf32> -> vector<8x64xf32>
    %180 = arith.addf %179, %158 : vector<8x64xf32>
    %181 = vector.broadcast %6 : vector<1x64xf32> to vector<8x64xf32>
    %182 = arith.addf %180, %181 : vector<8x64xf32>
    %183 = math.tanh %182 : vector<8x64xf32>
    %cst_46 = arith.constant 5.000000e-01 : f32
    %184 = vector.broadcast %cst_46 : f32 to vector<8x64xf32>
    %185 = arith.mulf %184, %183 : vector<8x64xf32>
    %cst_47 = arith.constant 5.000000e-01 : f32
    %186 = vector.broadcast %cst_47 : f32 to vector<8x64xf32>
    %187 = arith.addf %185, %186 : vector<8x64xf32>
    %188 = arith.select %33, %183, %187 : vector<8x64xi1>, vector<8x64xf32>
    %189 = vector.extract_strided_slice %188 {offsets = [0, 0], sizes = [8, 16], strides = [1, 1]} : vector<8x64xf32> to vector<8x16xf32>
    %190 = vector.extract_strided_slice %188 {offsets = [0, 16], sizes = [8, 16], strides = [1, 1]} : vector<8x64xf32> to vector<8x16xf32>
    %191 = vector.extract_strided_slice %188 {offsets = [0, 32], sizes = [8, 16], strides = [1, 1]} : vector<8x64xf32> to vector<8x16xf32>
    %192 = vector.extract_strided_slice %188 {offsets = [0, 48], sizes = [8, 16], strides = [1, 1]} : vector<8x64xf32> to vector<8x16xf32>
    %193 = arith.mulf %190, %154 : vector<8x16xf32>
    %194 = arith.mulf %189, %191 : vector<8x16xf32>
    %195 = arith.addf %193, %194 : vector<8x16xf32>
    %196 = math.tanh %195 : vector<8x16xf32>
    %197 = arith.mulf %192, %196 : vector<8x16xf32>
    %198 = arith.truncf %197 : vector<8x16xf32> to vector<8x16xbf16>
    %cst_48 = arith.constant dense<0.000000e+00> : vector<8x64xf32>
    %199 = tpu.matmul %198, %10, %cst_48 {dimension_numbers = #tpu.dot_dimension_numbers<[1], [0], [0], [1], [0, 0, 1, 1], [], []>} : vector<8x16xbf16>, vector<16x64xbf16>, vector<8x64xf32> -> vector<8x64xf32>
    %200 = arith.truncf %177 : vector<8x16xf32> to vector<8x16xbf16>
    %cst_49 = arith.constant dense<0.000000e+00> : vector<8x64xf32>
    %201 = tpu.matmul %200, %8, %cst_49 {dimension_numbers = #tpu.dot_dimension_numbers<[1], [0], [0], [1], [0, 0, 1, 1], [], []>} : vector<8x16xbf16>, vector<16x64xbf16>, vector<8x64xf32> -> vector<8x64xf32>
    %202 = vector.extract_strided_slice %27 {offsets = [32, 0], sizes = [8, 64], strides = [1, 1]} : vector<56x64xf32> to vector<8x64xf32>
    %203 = arith.addf %202, %201 : vector<8x64xf32>
    %204 = math.tanh %203 : vector<8x64xf32>
    %cst_50 = arith.constant 5.000000e-01 : f32
    %205 = vector.broadcast %cst_50 : f32 to vector<8x64xf32>
    %206 = arith.mulf %205, %204 : vector<8x64xf32>
    %cst_51 = arith.constant 5.000000e-01 : f32
    %207 = vector.broadcast %cst_51 : f32 to vector<8x64xf32>
    %208 = arith.addf %206, %207 : vector<8x64xf32>
    %209 = arith.select %33, %204, %208 : vector<8x64xi1>, vector<8x64xf32>
    %210 = vector.extract_strided_slice %209 {offsets = [0, 0], sizes = [8, 16], strides = [1, 1]} : vector<8x64xf32> to vector<8x16xf32>
    %211 = vector.extract_strided_slice %209 {offsets = [0, 16], sizes = [8, 16], strides = [1, 1]} : vector<8x64xf32> to vector<8x16xf32>
    %212 = vector.extract_strided_slice %209 {offsets = [0, 32], sizes = [8, 16], strides = [1, 1]} : vector<8x64xf32> to vector<8x16xf32>
    %213 = vector.extract_strided_slice %209 {offsets = [0, 48], sizes = [8, 16], strides = [1, 1]} : vector<8x64xf32> to vector<8x16xf32>
    %214 = arith.mulf %211, %175 : vector<8x16xf32>
    %215 = arith.mulf %210, %212 : vector<8x16xf32>
    %216 = arith.addf %214, %215 : vector<8x16xf32>
    %217 = math.tanh %216 : vector<8x16xf32>
    %218 = arith.mulf %213, %217 : vector<8x16xf32>
    %219 = arith.truncf %218 : vector<8x16xf32> to vector<8x16xbf16>
    %cst_52 = arith.constant dense<0.000000e+00> : vector<8x64xf32>
    %220 = tpu.matmul %219, %5, %cst_52 {dimension_numbers = #tpu.dot_dimension_numbers<[1], [0], [0], [1], [0, 0, 1, 1], [], []>} : vector<8x16xbf16>, vector<16x64xbf16>, vector<8x64xf32> -> vector<8x64xf32>
    %221 = arith.addf %220, %199 : vector<8x64xf32>
    %222 = vector.broadcast %6 : vector<1x64xf32> to vector<8x64xf32>
    %223 = arith.addf %221, %222 : vector<8x64xf32>
    %224 = math.tanh %223 : vector<8x64xf32>
    %cst_53 = arith.constant 5.000000e-01 : f32
    %225 = vector.broadcast %cst_53 : f32 to vector<8x64xf32>
    %226 = arith.mulf %225, %224 : vector<8x64xf32>
    %cst_54 = arith.constant 5.000000e-01 : f32
    %227 = vector.broadcast %cst_54 : f32 to vector<8x64xf32>
    %228 = arith.addf %226, %227 : vector<8x64xf32>
    %229 = arith.select %33, %224, %228 : vector<8x64xi1>, vector<8x64xf32>
    %230 = vector.extract_strided_slice %229 {offsets = [0, 0], sizes = [8, 16], strides = [1, 1]} : vector<8x64xf32> to vector<8x16xf32>
    %231 = vector.extract_strided_slice %229 {offsets = [0, 16], sizes = [8, 16], strides = [1, 1]} : vector<8x64xf32> to vector<8x16xf32>
    %232 = vector.extract_strided_slice %229 {offsets = [0, 32], sizes = [8, 16], strides = [1, 1]} : vector<8x64xf32> to vector<8x16xf32>
    %233 = vector.extract_strided_slice %229 {offsets = [0, 48], sizes = [8, 16], strides = [1, 1]} : vector<8x64xf32> to vector<8x16xf32>
    %234 = arith.mulf %231, %195 : vector<8x16xf32>
    %235 = arith.mulf %230, %232 : vector<8x16xf32>
    %236 = arith.addf %234, %235 : vector<8x16xf32>
    %237 = math.tanh %236 : vector<8x16xf32>
    %238 = arith.mulf %233, %237 : vector<8x16xf32>
    %239 = arith.truncf %238 : vector<8x16xf32> to vector<8x16xbf16>
    %cst_55 = arith.constant dense<0.000000e+00> : vector<8x64xf32>
    %240 = tpu.matmul %239, %10, %cst_55 {dimension_numbers = #tpu.dot_dimension_numbers<[1], [0], [0], [1], [0, 0, 1, 1], [], []>} : vector<8x16xbf16>, vector<16x64xbf16>, vector<8x64xf32> -> vector<8x64xf32>
    %241 = arith.truncf %218 : vector<8x16xf32> to vector<8x16xbf16>
    %cst_56 = arith.constant dense<0.000000e+00> : vector<8x64xf32>
    %242 = tpu.matmul %241, %8, %cst_56 {dimension_numbers = #tpu.dot_dimension_numbers<[1], [0], [0], [1], [0, 0, 1, 1], [], []>} : vector<8x16xbf16>, vector<16x64xbf16>, vector<8x64xf32> -> vector<8x64xf32>
    %243 = vector.extract_strided_slice %27 {offsets = [40, 0], sizes = [8, 64], strides = [1, 1]} : vector<56x64xf32> to vector<8x64xf32>
    %244 = arith.addf %243, %242 : vector<8x64xf32>
    %245 = math.tanh %244 : vector<8x64xf32>
    %cst_57 = arith.constant 5.000000e-01 : f32
    %246 = vector.broadcast %cst_57 : f32 to vector<8x64xf32>
    %247 = arith.mulf %246, %245 : vector<8x64xf32>
    %cst_58 = arith.constant 5.000000e-01 : f32
    %248 = vector.broadcast %cst_58 : f32 to vector<8x64xf32>
    %249 = arith.addf %247, %248 : vector<8x64xf32>
    %250 = arith.select %33, %245, %249 : vector<8x64xi1>, vector<8x64xf32>
    %251 = vector.extract_strided_slice %250 {offsets = [0, 0], sizes = [8, 16], strides = [1, 1]} : vector<8x64xf32> to vector<8x16xf32>
    %252 = vector.extract_strided_slice %250 {offsets = [0, 16], sizes = [8, 16], strides = [1, 1]} : vector<8x64xf32> to vector<8x16xf32>
    %253 = vector.extract_strided_slice %250 {offsets = [0, 32], sizes = [8, 16], strides = [1, 1]} : vector<8x64xf32> to vector<8x16xf32>
    %254 = vector.extract_strided_slice %250 {offsets = [0, 48], sizes = [8, 16], strides = [1, 1]} : vector<8x64xf32> to vector<8x16xf32>
    %255 = arith.mulf %252, %216 : vector<8x16xf32>
    %256 = arith.mulf %251, %253 : vector<8x16xf32>
    %257 = arith.addf %255, %256 : vector<8x16xf32>
    %258 = math.tanh %257 : vector<8x16xf32>
    %259 = arith.mulf %254, %258 : vector<8x16xf32>
    %260 = arith.truncf %259 : vector<8x16xf32> to vector<8x16xbf16>
    %cst_59 = arith.constant dense<0.000000e+00> : vector<8x64xf32>
    %261 = tpu.matmul %260, %5, %cst_59 {dimension_numbers = #tpu.dot_dimension_numbers<[1], [0], [0], [1], [0, 0, 1, 1], [], []>} : vector<8x16xbf16>, vector<16x64xbf16>, vector<8x64xf32> -> vector<8x64xf32>
    %262 = arith.addf %261, %240 : vector<8x64xf32>
    %263 = vector.broadcast %6 : vector<1x64xf32> to vector<8x64xf32>
    %264 = arith.addf %262, %263 : vector<8x64xf32>
    %265 = math.tanh %264 : vector<8x64xf32>
    %cst_60 = arith.constant 5.000000e-01 : f32
    %266 = vector.broadcast %cst_60 : f32 to vector<8x64xf32>
    %267 = arith.mulf %266, %265 : vector<8x64xf32>
    %cst_61 = arith.constant 5.000000e-01 : f32
    %268 = vector.broadcast %cst_61 : f32 to vector<8x64xf32>
    %269 = arith.addf %267, %268 : vector<8x64xf32>
    %270 = arith.select %33, %265, %269 : vector<8x64xi1>, vector<8x64xf32>
    %271 = vector.extract_strided_slice %270 {offsets = [0, 0], sizes = [8, 16], strides = [1, 1]} : vector<8x64xf32> to vector<8x16xf32>
    %272 = vector.extract_strided_slice %270 {offsets = [0, 16], sizes = [8, 16], strides = [1, 1]} : vector<8x64xf32> to vector<8x16xf32>
    %273 = vector.extract_strided_slice %270 {offsets = [0, 32], sizes = [8, 16], strides = [1, 1]} : vector<8x64xf32> to vector<8x16xf32>
    %274 = vector.extract_strided_slice %270 {offsets = [0, 48], sizes = [8, 16], strides = [1, 1]} : vector<8x64xf32> to vector<8x16xf32>
    %275 = arith.mulf %272, %236 : vector<8x16xf32>
    %276 = arith.mulf %271, %273 : vector<8x16xf32>
    %277 = arith.addf %275, %276 : vector<8x16xf32>
    %278 = math.tanh %277 : vector<8x16xf32>
    %279 = arith.mulf %274, %278 : vector<8x16xf32>
    %280 = arith.truncf %279 : vector<8x16xf32> to vector<8x16xbf16>
    %cst_62 = arith.constant dense<0.000000e+00> : vector<8x64xf32>
    %281 = tpu.matmul %280, %10, %cst_62 {dimension_numbers = #tpu.dot_dimension_numbers<[1], [0], [0], [1], [0, 0, 1, 1], [], []>} : vector<8x16xbf16>, vector<16x64xbf16>, vector<8x64xf32> -> vector<8x64xf32>
    %282 = arith.truncf %259 : vector<8x16xf32> to vector<8x16xbf16>
    %cst_63 = arith.constant dense<0.000000e+00> : vector<8x64xf32>
    %283 = tpu.matmul %282, %8, %cst_63 {dimension_numbers = #tpu.dot_dimension_numbers<[1], [0], [0], [1], [0, 0, 1, 1], [], []>} : vector<8x16xbf16>, vector<16x64xbf16>, vector<8x64xf32> -> vector<8x64xf32>
    %284 = vector.extract_strided_slice %27 {offsets = [48, 0], sizes = [8, 64], strides = [1, 1]} : vector<56x64xf32> to vector<8x64xf32>
    %285 = arith.addf %284, %283 : vector<8x64xf32>
    %286 = math.tanh %285 : vector<8x64xf32>
    %cst_64 = arith.constant 5.000000e-01 : f32
    %287 = vector.broadcast %cst_64 : f32 to vector<8x64xf32>
    %288 = arith.mulf %287, %286 : vector<8x64xf32>
    %cst_65 = arith.constant 5.000000e-01 : f32
    %289 = vector.broadcast %cst_65 : f32 to vector<8x64xf32>
    %290 = arith.addf %288, %289 : vector<8x64xf32>
    %291 = arith.select %33, %286, %290 : vector<8x64xi1>, vector<8x64xf32>
    %292 = vector.extract_strided_slice %291 {offsets = [0, 0], sizes = [8, 16], strides = [1, 1]} : vector<8x64xf32> to vector<8x16xf32>
    %293 = vector.extract_strided_slice %291 {offsets = [0, 16], sizes = [8, 16], strides = [1, 1]} : vector<8x64xf32> to vector<8x16xf32>
    %294 = vector.extract_strided_slice %291 {offsets = [0, 32], sizes = [8, 16], strides = [1, 1]} : vector<8x64xf32> to vector<8x16xf32>
    %295 = vector.extract_strided_slice %291 {offsets = [0, 48], sizes = [8, 16], strides = [1, 1]} : vector<8x64xf32> to vector<8x16xf32>
    %296 = arith.mulf %293, %257 : vector<8x16xf32>
    %297 = arith.mulf %292, %294 : vector<8x16xf32>
    %298 = arith.addf %296, %297 : vector<8x16xf32>
    %299 = math.tanh %298 : vector<8x16xf32>
    %300 = arith.mulf %295, %299 : vector<8x16xf32>
    %301 = arith.truncf %300 : vector<8x16xf32> to vector<8x16xbf16>
    %cst_66 = arith.constant dense<0.000000e+00> : vector<8x64xf32>
    %302 = tpu.matmul %301, %5, %cst_66 {dimension_numbers = #tpu.dot_dimension_numbers<[1], [0], [0], [1], [0, 0, 1, 1], [], []>} : vector<8x16xbf16>, vector<16x64xbf16>, vector<8x64xf32> -> vector<8x64xf32>
    %303 = arith.addf %302, %281 : vector<8x64xf32>
    %304 = vector.broadcast %6 : vector<1x64xf32> to vector<8x64xf32>
    %305 = arith.addf %303, %304 : vector<8x64xf32>
    %306 = math.tanh %305 : vector<8x64xf32>
    %cst_67 = arith.constant 5.000000e-01 : f32
    %307 = vector.broadcast %cst_67 : f32 to vector<8x64xf32>
    %308 = arith.mulf %307, %306 : vector<8x64xf32>
    %cst_68 = arith.constant 5.000000e-01 : f32
    %309 = vector.broadcast %cst_68 : f32 to vector<8x64xf32>
    %310 = arith.addf %308, %309 : vector<8x64xf32>
    %311 = arith.select %33, %306, %310 : vector<8x64xi1>, vector<8x64xf32>
    %312 = vector.extract_strided_slice %311 {offsets = [0, 0], sizes = [8, 16], strides = [1, 1]} : vector<8x64xf32> to vector<8x16xf32>
    %313 = vector.extract_strided_slice %311 {offsets = [0, 16], sizes = [8, 16], strides = [1, 1]} : vector<8x64xf32> to vector<8x16xf32>
    %314 = vector.extract_strided_slice %311 {offsets = [0, 32], sizes = [8, 16], strides = [1, 1]} : vector<8x64xf32> to vector<8x16xf32>
    %315 = vector.extract_strided_slice %311 {offsets = [0, 48], sizes = [8, 16], strides = [1, 1]} : vector<8x64xf32> to vector<8x16xf32>
    %316 = arith.mulf %313, %277 : vector<8x16xf32>
    %317 = arith.mulf %312, %314 : vector<8x16xf32>
    %318 = arith.addf %316, %317 : vector<8x16xf32>
    %319 = math.tanh %318 : vector<8x16xf32>
    %320 = arith.mulf %315, %319 : vector<8x16xf32>
    %cst_69 = arith.constant dense<0.000000e+00> : vector<8x6xf32>
    %321 = tpu.matmul %320, %11, %cst_69 {dimension_numbers = #tpu.dot_dimension_numbers<[1], [0], [0], [1], [0, 0, 1, 1], [], []>} : vector<8x16xf32>, vector<16x6xf32>, vector<8x6xf32> -> vector<8x6xf32>
    %322 = vector.broadcast %12 : vector<1x6xf32> to vector<8x6xf32>
    %323 = arith.addf %321, %322 : vector<8x6xf32>
    %cst_70 = arith.constant 0.000000e+00 : f32
    %324 = vector.broadcast %cst_70 : f32 to vector<8x6xf32>
    %325 = arith.maximumf %323, %324 : vector<8x6xf32>
    %cst_71 = arith.constant dense<0.000000e+00> : vector<8x1xf32>
    %326 = tpu.matmul %325, %13, %cst_71 {dimension_numbers = #tpu.dot_dimension_numbers<[1], [0], [0], [1], [0, 0, 1, 1], [], []>} : vector<8x6xf32>, vector<6x1xf32>, vector<8x1xf32> -> vector<8x1xf32>
    %327 = vector.broadcast %14 : vector<1x1xf32> to vector<8x1xf32>
    %328 = arith.addf %326, %327 : vector<8x1xf32>
    %c0_72 = arith.constant 0 : index
    %c0_73 = arith.constant 0 : index
    %329 = vector.load %arg2[%c0_72, %c0_73] : memref<8x1xf32, #tpu.memory_space<vmem>>, vector<8x1xf32>
    tpu.vector_store %arg2[%c0_72, %c0_73], %328 {strides = array<i32>} : memref<8x1xf32, #tpu.memory_space<vmem>>, vector<8x1xf32>,
    return
  }
}

</mosaic_0001>

<bundles_post_ra>
// kernel: tpu_custom_call.1
= control target key start
LH: loop header
LB: loop body
LE: loop exit
PB: predicated region body
PF: predicated region fallthrough
CT: control target
= control target key end

     0   :  { %7 = vsyncpa [#allocation3], 0  ;;  %s2148_s9 = smov [#allocation2]   ;;  %s2542_s0 = inlined_call_operand.vmem [shape: f32[56,18], index: 0, kind: input, shape index: {}]   ;;  %s2543_s1 = inlined_call_operand.hbm [shape: f32[176,128], index: 1, kind: input, shape index: {}]   ;;  %s2544_s2 = inlined_call_operand.vmem [shape: f32[8,1], index: 2, kind: output, shape index: {}]  }
   0x1   :  { %s15_s10 = sshll.u32 %s2148_s9, 4  ;;  %s2124_s13 = scalar_lea.hbm %s2543_s1, 2816  ;;  %s16_s10 = int_to_ptr.vmem [resolvable:$true] %s15_s10 }
   0x2   :  { %p2125_p0 = scmp.ne.s32.totalorder %s2543_s1, %s2124_s13  ;;  %p2128_p1 = scmp.lt.u32.totalorder %s2124_s13, %s2543_s1 }
   0x4   :  { %p2130_p2 = pnand %p2128_p1, %p2125_p0 }
   0x6   :  { %2133 = shalt.err (!%p2130_p2)
}
   0x7   :  { %s2134_s18 = scalar_lea.vmem %s16_s10, 2816  ;;  %p2139_p4 = scmp.lt.s32.totalorder %s16_s10, %s16_s10 }
   0x8   :  { %p2135_p3 = scmp.ne.s32.totalorder %s16_s10, %s2134_s18  ;;  %p2140_p5 = scmp.lt.s32.totalorder %s2134_s18, %s2134_s18 }
   0xa   :  { %p2141_p6 = por %p2140_p5, %p2139_p4 }
   0xc   :  { %p2142_p7 = pnand %p2141_p6, %p2135_p3 }
   0xe   :  { %2145 = shalt.err (!%p2142_p7)
}
   0xf   :  { %s2149_s19 = smov 128   ;;  %s2150_s20 = smov 8  }
  0x10   :  { %21 = dma.hbm_to_vmem [thread:$0]  %s2543_s1, 2816, %s16_s10, [#allocation3], %s2149_s19, %s2149_s19, %s2150_s20  }
  0x11   :  { %2146 = dma.done.wait [#allocation3], 2816  }
  0x12   :  { %2147 = vsyncadd [#allocation3], 4294964480  ;;  %v2151_v0 = vmov 0.0|0.0   ;;  %vm2152_vm0 = vmmov 0   ;;  %v2153_v1 = vmov 0.0   ;;  %v26_v2 = vld [vmem:[#allocation2] sm:$0xff]  ;;  %v321_v57 = vlaneseq }
  0x13   :  { %2052 = vmatprep.subr.bf16.mxu0 %v2151_v0  ;;  %1870 = vmatprep.mubr.msk.f32.mxu0 %vm2152_vm0, %v2153_v1  ;;  %v27_v3 = vld [vmem:[#allocation2 + $0x8] sm:$0xff]  ;;  %v37_v6 = vld [vmem:[#allocation2 + $0x50] sm:$0xff]  ;;  %vm84_vm1 = vcmask 1041408   ;;  %v51_v8 = vld [vmem:[%s2542_s0] sm:$0xff]  ;;  %vm62_vm2 = vcmask 146432   ;;  %vm327_vm3 = vcmask 130048  }
  0x14   :  { %1891 = vmatprep.subr.mxu1 %v2153_v1  ;;  %1893 = vmatprep.mubr.msk.f32.mxu1 %vm2152_vm0, %v2153_v1  ;;  %v2053_v4 = vpack.c.bf16 %v27_v3, %v26_v2  ;;  %v36_v5 = vld [vmem:[#allocation2 + $0x48] sm:$0xff]  ;;  %v28_v7 = vld [vmem:[#allocation2 + $0x10] sm:$0x3]  ;;  %v54_v12 = vld [vmem:[%s2542_s0 + $0x18] sm:$0xff]  ;;  %vm199_vm4 = vcmask 64512   ;;  %v322_v58 = vand.u32 127, %v321_v57 }
  0x15   :  { %v2195_v9 = vpack.c.bf16 %v37_v6, %v36_v5  ;;  %v52_v10 = vld [vmem:[%s2542_s0 + $0x8] sm:$0xff]  ;;  %v53_v11 = vld [vmem:[%s2542_s0 + $0x10] sm:$0xff]  ;;  %v55_v13 = vld [vmem:[%s2542_s0 + $0x20] sm:$0xff]  ;;  %s2155_s8 = smov 16   ;;  %s2156_s9 = smov 32   ;;  %vm1674_vm8 = vcmask 1045504  }
  0x16   :  { %2054 = vmatpush3.bf16.msra.mxu0 %v2053_v4  ;;  %v56_v14 = vld [vmem:[%s2542_s0 + $0x28] sm:$0xff]  ;;  %v57_v15 = vld [vmem:[%s2542_s0 + $0x30] sm:$0xff]  ;;  %v30_v18 = vld [vmem:[#allocation2 + $0x20] sm:$0xff]  ;;  %vm323_vm5 = vcmp.ge.s32.totalorder %v322_v58, 32  ;;  %vm324_vm6 = vcmp.lt.s32.totalorder %v322_v58, 48  ;;  %s2154_s0 = smov 96  }
  0x17   :  { %1868 = vmatprep.subr.mxu0 %v2153_v1  ;;  %v47_v16 = vld [vmem:[#allocation2 + $0x68] sm:$0xff]  ;;  %1892 = vmatpush3.msra.mxu1 %v30_v18  ;;  %v1755_v19 = vld [vmem:[#allocation2 + $0x18] ss:$0 sm:$0xff]  ;;  %vm2273_vm7 = vmand %vm323_vm5, %vm324_vm6  ;;  %s2157_s10 = smov 80   ;;  %vm1670_vm9 = vcmask 48128   ;;  %vm1748_vm10 = vcmask 7168  }
  0x18   :  { %v371_v17 = vpack.c.bf16 %v47_v16, %v47_v16  ;;  %1914 = vmatprep.subr.bf16.mxu1 %v2153_v1  ;;  %v2264_v52 = vld [vmem:[#allocation2 + $0x28] ss:$0 sm:$0xff]  ;;  %v50_v58 = vld [vmem:[#allocation2 + $0x80] sm:$0xff] }
  0x1a   :  { %1869 = vmatpush3.msk.msra.mxu0 %vm84_vm1, %v28_v7 }
  0x1b   :  { %1871 = vmatmul.mubr.msk.f32.vlgmr.msra.gmra.mrb[0].mxu0 %vm62_vm2, %v51_v8  ;;  %1920 = vmatprep.subr.bf16.mxu0 %v2153_v1 }
  0x1c   :  { %1873 = vmatprep.mubr.msk.f32.mxu0 %vm2152_vm0, %v2153_v1  ;;  %1921 = vmatpush3.bf16.msra.mxu0 %v2195_v9 }
  0x1d   :  { %1932 = vmatprep.subr.bf16.mxu0 %v2153_v1 }
  0x1f   :  { %1874 = vmatmul.mubr.msk.f32.gmra.mrb[2].mxu0 %vm62_vm2, %v52_v10 }
  0x20   :  { %1876 = vmatprep.mubr.msk.f32.mxu0 %vm2152_vm0, %v2153_v1 }
  0x23   :  { %1877 = vmatmul.mubr.msk.f32.gmra.mrb[4].mxu0 %vm62_vm2, %v53_v11 }
  0x24   :  { %1879 = vmatprep.mubr.msk.f32.mxu0 %vm2152_vm0, %v2153_v1 }
  0x27   :  { %1880 = vmatmul.mubr.msk.f32.gmra.mrb[6].mxu0 %vm62_vm2, %v54_v12 }
  0x28   :  { %1882 = vmatprep.mubr.msk.f32.mxu0 %vm2152_vm0, %v2153_v1 }
  0x2b   :  { %1883 = vmatmul.mubr.msk.f32.gmra.mrb[8].mxu0 %vm62_vm2, %v55_v13  ;;  %v49_v13 = vld [vmem:[#allocation2 + $0x78] sm:$0xff] }
  0x2c   :  { %1885 = vmatprep.mubr.msk.f32.mxu0 %vm2152_vm0, %v2153_v1 }
  0x2f   :  { %1886 = vmatmul.mubr.msk.f32.gmra.mrb[10].mxu0 %vm62_vm2, %v56_v14 }
  0x30   :  { %1888 = vmatprep.mubr.msk.f32.mxu0 %vm2152_vm0, %v2153_v1 }
  0x33   :  { %1889 = vmatmul.mubr.msk.f32.gmra.mrb[12].mxu0 %vm62_vm2, %v57_v15 }
  0x34   :  { %1922 = vmatprep.mubr.msk.bf16.mxu0 %vm2152_vm0, %v2153_v1 }
  0x37   :  { %1923 = vmatmul.mubr.msk.bf16.vlgmr.msra.gmra.mrb[16].mxu0 %vm327_vm3, %v371_v17 }
  0x38   :  { %1934 = vmatprep.mubr.msk.bf16.mxu0 %vm2152_vm0, %v2153_v1 }
  0xee   :  { %v154_v20 = vpop.f32.mrb[0].mxu0 }
  0xef   :  { %v155_v21 = vadd.f32 %v1755_v19, %v154_v20  ;;  %v1872_v22 = vpop.f32.mrb[1].mxu0 }
  0xf0   :  { %v39_v22 = vld [vmem:[#allocation2 + $0x58] sm:$0xff] }
  0xf1   :  { %v188_v23 = vmax.f32 %v155_v21, 0.0 }
  0xf2   :  { %v159_v24 = vpop.f32.mrb[2].mxu0 }
  0xf3   :  { %1894 = vmatmul.mubr.msk.f32.vlgmr.msra.gmra.mrb[0].mxu1 %vm199_vm4, %v188_v23  ;;  %v160_v25 = vadd.f32 %v1755_v19, %v159_v24  ;;  %v1875_v26 = vpop.f32.mrb[3].mxu0  ;;  %v40_v23 = vld [vmem:[#allocation2 + $0x60] sm:$0xff]  ;;  %v48_v24 = vld [vmem:[#allocation2 + $0x70] sm:$0xff] }
  0xf4   :  { %1896 = vmatprep.mubr.msk.f32.mxu1 %vm2152_vm0, %v2153_v1  ;;  %v32_v26 = vld [vmem:[#allocation2 + $0x30] sm:$0xff] }
  0xf5   :  { %v189_v27 = vmax.f32 %v160_v25, 0.0  ;;  %v2291_v25 = vpack.c.bf16 %v40_v23, %v39_v22 }
  0xf6   :  { %v164_v28 = vpop.f32.mrb[4].mxu0 }
  0xf7   :  { %v165_v29 = vadd.f32 %v1755_v19, %v164_v28  ;;  %v1878_v30 = vpop.f32.mrb[5].mxu0  ;;  %1897 = vmatmul.mubr.msk.f32.gmra.mrb[2].mxu1 %vm199_vm4, %v189_v27  ;;  %v33_v27 = vld [vmem:[#allocation2 + $0x38] sm:$0xff]  ;;  %v326_v28 = vpack.c.bf16 %v48_v24, %v48_v24  ;;  %1933 = vmatpush3.bf16.msra.mxu0 %v2291_v25 }
  0xf8   :  { %1899 = vmatprep.mubr.msk.f32.mxu1 %vm2152_vm0, %v2153_v1  ;;  %1915 = vmatpush3.bf16.msra.mxu1 %v2291_v25 }
  0xf9   :  { %v190_v31 = vmax.f32 %v165_v29, 0.0  ;;  %v2294_v29 = vpack.c.bf16 %v33_v27, %v32_v26  ;;  %1926 = vmatprep.subr.bf16.mxu1 %v2153_v1  ;;  %1944 = vmatprep.subr.bf16.mxu0 %v2153_v1 }
  0xfa   :  { %v169_v32 = vpop.f32.mrb[6].mxu0 }
  0xfb   :  { %v170_v33 = vadd.f32 %v1755_v19, %v169_v32  ;;  %v1881_v34 = vpop.f32.mrb[7].mxu0  ;;  %1900 = vmatmul.mubr.msk.f32.gmra.mrb[4].mxu1 %vm199_vm4, %v190_v31 }
  0xfc   :  { %1902 = vmatprep.mubr.msk.f32.mxu1 %vm2152_vm0, %v2153_v1 }
  0xfd   :  { %v191_v35 = vmax.f32 %v170_v33, 0.0 }
  0xfe   :  { %v174_v36 = vpop.f32.mrb[8].mxu0 }
  0xff   :  { %v175_v37 = vadd.f32 %v1755_v19, %v174_v36  ;;  %v1884_v38 = vpop.f32.mrb[9].mxu0  ;;  %1903 = vmatmul.mubr.msk.f32.gmra.mrb[6].mxu1 %vm199_vm4, %v191_v35 }
 0x100   :  { %1905 = vmatprep.mubr.msk.f32.mxu1 %vm2152_vm0, %v2153_v1 }
 0x101   :  { %v192_v39 = vmax.f32 %v175_v37, 0.0 }
 0x102   :  { %v179_v40 = vpop.f32.mrb[10].mxu0 }
 0x103   :  { %v180_v41 = vadd.f32 %v1755_v19, %v179_v40  ;;  %v1887_v42 = vpop.f32.mrb[11].mxu0  ;;  %1906 = vmatmul.mubr.msk.f32.gmra.mrb[8].mxu1 %vm199_vm4, %v192_v39  ;;  %v2316_v39 = vld [vmem:[#allocation2 + $0x40] ss:$0 sm:$0xff] }
 0x104   :  { %1908 = vmatprep.mubr.msk.f32.mxu1 %vm2152_vm0, %v2153_v1 }
 0x105   :  { %v193_v43 = vmax.f32 %v180_v41, 0.0 }
 0x106   :  { %v184_v44 = vpop.f32.mrb[12].mxu0 }
 0x107   :  { %1909 = vmatmul.mubr.msk.f32.gmra.mrb[10].mxu1 %vm199_vm4, %v193_v43  ;;  %v185_v45 = vadd.f32 %v1755_v19, %v184_v44  ;;  %v1890_v46 = vpop.f32.mrb[13].mxu0 }
 0x108   :  { %1911 = vmatprep.mubr.msk.f32.mxu1 %vm2152_vm0, %v2153_v1 }
 0x109   :  { %v194_v47 = vmax.f32 %v185_v45, 0.0 }
 0x10a   :  { %v409_v48 = vpop.f32.mrb[16].mxu0 }
 0x10b   :  { %v1924_v49 = vpop.f32.mrb[17].mxu0  ;;  %1912 = vmatmul.mubr.msk.f32.gmra.mrb[12].mxu1 %vm199_vm4, %v194_v47 }
 0x10c   :  { %v412_v50 = vpop.f32.mrb[18].mxu0  ;;  %1916 = vmatprep.mubr.msk.bf16.mxu1 %vm2152_vm0, %v2153_v1 }
 0x10d   :  { %v1925_v51 = vpop.f32.mrb[19].mxu0 }
 0x10f   :  { %1917 = vmatmul.mubr.msk.bf16.vlgmr.msra.gmra.mrb[16].mxu1 %vm327_vm3, %v326_v28 }
 0x110   :  { %1927 = vmatpush3.bf16.msra.mxu1 %v2294_v29  ;;  %1928 = vmatprep.mubr.msk.bf16.mxu1 %vm2152_vm0, %v2153_v1 }
 0x111   :  { %1938 = vmatprep.subr.bf16.mxu1 %v2153_v1 }
 0x1c6   :  { %v287_v53 = vpop.f32.mrb[0].mxu1 }
 0x1c7   :  { %v288_v54 = vadd.f32 %v2264_v52, %v287_v53  ;;  %v1895_v55 = vpop.f32.mrb[1].mxu1 }
 0x1c9   :  { %v415_v56 = vadd.f32 %v409_v48, %v288_v54 }
 0x1ca   :  { %v2267_v59 = vpop.f32.mrb[2].mxu1 }
 0x1cb   :  { %2068 = vtanh.f32 %v415_v56  ;;  %v1898_v60 = vpop.f32.mrb[3].mxu1  ;;  %v293_v46 = vadd.f32 %v2264_v52, %v2267_v59 }
 0x1ce   :  { %v2269_v61 = vpop.f32.mrb[4].mxu1 }
 0x1cf   :  { %v1901_v63 = vpop.f32.mrb[5].mxu1 }
 0x1d2   :  { %v2271_v3 = vpop.f32.mrb[6].mxu1 }
 0x1d3   :  { %v1904_v5 = vpop.f32.mrb[7].mxu1 }
 0x1d5   :  { %v2069_v62 = vpop.eup %2068 }
 0x1d6   :  { %v417_v2 = vmul.f32 0.5, %v2069_v62  ;;  %v2277_v7 = vpop.f32.mrb[8].mxu1 }
 0x1d7   :  { %v1907_v8 = vpop.f32.mrb[9].mxu1 }
 0x1d8   :  { %v418_v6 = vadd.f32 0.5, %v417_v2 }
 0x1da   :  { %v419_v10 = vsel %vm2273_vm7, %v2069_v62, %v418_v6  ;;  %v2281_v11 = vpop.f32.mrb[10].mxu1 }
 0x1db   :  { %426 = vrot.lane.b32.xlu0 %v419_v10, %s2154_s0  ;;  %v1910_v12 = vpop.f32.mrb[11].mxu1 }
 0x1de   :  { %v2285_v14 = vpop.f32.mrb[12].mxu1 }
 0x1df   :  { %421 = vrot.lane.b32.xlu0 %v49_v13, %s2155_s8  ;;  %v1913_v15 = vpop.f32.mrb[13].mxu1 }
 0x1e2   :  { %v365_v34 = vpop.f32.mrb[16].mxu1 }
 0x1e3   :  { %v1918_v35 = vpop.f32.mrb[17].mxu1 }
 0x1e4   :  { %v368_v36 = vpop.f32.mrb[18].mxu1 }
 0x1e5   :  { %v1919_v37 = vpop.f32.mrb[19].mxu1 }
 0x24d   :  { %v427_v16 = vpop.permute.xlu0 %426 }
 0x24e   :  { %v429_v17 = vmul.f32 %v427_v16, %v419_v10 }
 0x250   :  { %431 = vrot.lane.b32.xlu1 %v429_v17, %s2155_s8 }
 0x251   :  { %v422_v18 = vpop.permute.xlu0 %421 }
 0x252   :  { %v424_v19 = vmul.f32 %v422_v18, %v419_v10 }
 0x2c2   :  { %v432_v20 = vpop.permute.xlu1 %431 }
 0x2c3   :  { %v2288_v21 = vadd.f32 %v432_v20, %v424_v19 }
 0x2c5   :  { %2070 = vtanh.f32 %v2288_v21 }
 0x2cf   :  { %v2071_v30 = vpop.eup %2070 }
 0x2d0   :  { %437 = vrot.lane.b32.xlu1 %v2071_v30, %s2156_s9 }
 0x342   :  { %v438_v31 = vpop.permute.xlu1 %437 }
 0x343   :  { %v440_v32 = vmul.f32 %v438_v31, %v419_v10 }
 0x345   :  { %v441_v33 = vpack.c.bf16 %v440_v32, %v440_v32 }
 0x347   :  { %443 = vrot.lane.b32.xlu0 %v441_v33, %s2157_s10 }
 0x3b9   :  { %v444_v38 = vpop.permute.xlu0 %443 }
 0x3ba   :  { %1929 = vmatmul.mubr.msk.bf16.vlgmr.msra.gmra.mrb[20].mxu1 %vm327_vm3, %v444_v38 }
 0x3bb   :  { %1939 = vmatpush3.bf16.msra.mxu1 %v2195_v9  ;;  %1940 = vmatprep.mubr.msk.bf16.mxu1 %vm2152_vm0, %v2153_v1 }
 0x3bc   :  { %1950 = vmatprep.subr.bf16.mxu1 %v2153_v1 }
 0x3c2   :  { %1941 = vmatmul.mubr.msk.bf16.vlgmr.msra.gmra.mrb[24].mxu1 %vm327_vm3, %v444_v38 }
 0x3c3   :  { %1951 = vmatpush3.bf16.msra.mxu1 %v2291_v25  ;;  %1952 = vmatprep.mubr.msk.bf16.mxu1 %vm2152_vm0, %v2153_v1 }
 0x3c4   :  { %1962 = vmatprep.subr.bf16.mxu1 %v2153_v1 }
 0x48d   :  { %v482_v40 = vpop.f32.mrb[20].mxu1 }
 0x48e   :  { %v483_v41 = vadd.f32 %v482_v40, %v365_v34  ;;  %v1930_v42 = vpop.f32.mrb[21].mxu1 }
 0x48f   :  { %v485_v43 = vpop.f32.mrb[22].mxu1 }
 0x490   :  { %v492_v44 = vadd.f32 %v2316_v39, %v483_v41  ;;  %v1931_v45 = vpop.f32.mrb[23].mxu1  ;;  %v298_v41 = vadd.f32 %v2264_v52, %v2269_v61 }
 0x492   :  { %2072 = vtanh.f32 %v492_v44 }
 0x495   :  { %v599_v47 = vpop.f32.mrb[24].mxu1 }
 0x496   :  { %v605_v48 = vadd.f32 %v599_v47, %v293_v46  ;;  %v1942_v49 = vpop.f32.mrb[25].mxu1 }
 0x497   :  { %v602_v50 = vpop.f32.mrb[26].mxu1 }
 0x498   :  { %2074 = vtanh.f32 %v605_v48  ;;  %v1943_v51 = vpop.f32.mrb[27].mxu1 }
 0x49c   :  { %v2073_v53 = vpop.eup %2072 }
 0x49d   :  { %v494_v54 = vmul.f32 0.5, %v2073_v53 }
 0x49f   :  { %v495_v55 = vadd.f32 0.5, %v494_v54 }
 0x4a1   :  { %v496_v56 = vsel %vm2273_vm7, %v2073_v53, %v495_v55 }
 0x4a2   :  { %v2075_v57 = vpop.eup %2074  ;;  %503 = vrot.lane.b32.xlu1 %v496_v56, %s2154_s0 }
 0x4a3   :  { %v607_v60 = vmul.f32 0.5, %v2075_v57 }
 0x4a5   :  { %v608_v62 = vadd.f32 0.5, %v607_v60 }
 0x4a6   :  { %498 = vrot.lane.b32.xlu1 %v50_v58, %s2155_s8 }
 0x4a7   :  { %v609_v59 = vsel %vm2273_vm7, %v2075_v57, %v608_v62 }
 0x4a8   :  { %612 = vrot.lane.b32.xlu0 %v609_v59, %s2154_s0  ;;  %v610_v15 = vmul.f32 %v609_v59, %v2288_v21 }
 0x514   :  { %v504_v63 = vpop.permute.xlu1 %503 }
 0x515   :  { %v506_v2 = vmul.f32 %v504_v63, %v496_v56 }
 0x517   :  { %508 = vrot.lane.b32.xlu0 %v506_v2, %s2155_s8 }
 0x518   :  { %v499_v8 = vpop.permute.xlu1 %498 }
 0x519   :  { %v501_v10 = vmul.f32 %v499_v8, %v496_v56 }
 0x51a   :  { %v613_v5 = vpop.permute.xlu0 %612 }
 0x51b   :  { %v615_v6 = vmul.f32 %v613_v5, %v609_v59 }
 0x51d   :  { %617 = vrot.lane.b32.xlu1 %v615_v6, %s2155_s8 }
 0x589   :  { %v509_v12 = vpop.permute.xlu0 %508 }
 0x58a   :  { %v2330_v13 = vadd.f32 %v509_v12, %v501_v10 }
 0x58c   :  { %2076 = vtanh.f32 %v2330_v13 }
 0x58f   :  { %v618_v16 = vpop.permute.xlu1 %617 }
 0x590   :  { %v2334_v17 = vadd.f32 %v618_v16, %v610_v15 }
 0x592   :  { %2078 = vtanh.f32 %v2334_v17 }
 0x596   :  { %v2077_v18 = vpop.eup %2076 }
 0x597   :  { %514 = vrot.lane.b32.xlu0 %v2077_v18, %s2156_s9 }
 0x59c   :  { %v2079_v19 = vpop.eup %2078 }
 0x59d   :  { %623 = vrot.lane.b32.xlu1 %v2079_v19, %s2156_s9 }
 0x609   :  { %v515_v20 = vpop.permute.xlu0 %514 }
 0x60a   :  { %v517_v22 = vmul.f32 %v515_v20, %v496_v56 }
 0x60c   :  { %v518_v23 = vpack.c.bf16 %v517_v22, %v517_v22 }
 0x60e   :  { %520 = vrot.lane.b32.xlu0 %v518_v23, %s2157_s10 }
 0x60f   :  { %v624_v24 = vpop.permute.xlu1 %623 }
 0x610   :  { %v626_v26 = vmul.f32 %v624_v24, %v609_v59 }
 0x612   :  { %v627_v27 = vpack.c.bf16 %v626_v26, %v626_v26 }
 0x614   :  { %629 = vrot.lane.b32.xlu1 %v627_v27, %s2157_s10 }
 0x680   :  { %v521_v21 = vpop.permute.xlu0 %520 }
 0x681   :  { %1935 = vmatmul.mubr.msk.bf16.vlgmr.msra.gmra.mrb[20].mxu0 %vm327_vm3, %v521_v21 }
 0x682   :  { %1945 = vmatpush3.bf16.msra.mxu0 %v2294_v29  ;;  %1946 = vmatprep.mubr.msk.bf16.mxu0 %vm2152_vm0, %v2153_v1 }
 0x683   :  { %1956 = vmatprep.subr.bf16.mxu0 %v2153_v1 }
 0x686   :  { %v630_v28 = vpop.permute.xlu1 %629 }
 0x689   :  { %1947 = vmatmul.mubr.msk.bf16.vlgmr.msra.gmra.mrb[24].mxu0 %vm327_vm3, %v630_v28 }
 0x68a   :  { %1957 = vmatpush3.bf16.msra.mxu0 %v2195_v9  ;;  %1958 = vmatprep.mubr.msk.bf16.mxu0 %vm2152_vm0, %v2153_v1 }
 0x68b   :  { %1968 = vmatprep.subr.bf16.mxu0 %v2153_v1 }
 0x691   :  { %1959 = vmatmul.mubr.msk.bf16.vlgmr.msra.gmra.mrb[28].mxu0 %vm327_vm3, %v630_v28 }
 0x692   :  { %1969 = vmatpush3.bf16.msra.mxu0 %v2291_v25  ;;  %1970 = vmatprep.mubr.msk.bf16.mxu0 %vm2152_vm0, %v2153_v1 }
 0x693   :  { %1980 = vmatprep.subr.bf16.mxu0 %v2153_v1 }
 0x754   :  { %v559_v30 = vpop.f32.mrb[20].mxu0 }
 0x755   :  { %v1936_v31 = vpop.f32.mrb[21].mxu0 }
 0x756   :  { %v562_v32 = vpop.f32.mrb[22].mxu0 }
 0x757   :  { %v1937_v33 = vpop.f32.mrb[23].mxu0  ;;  %v303_v32 = vadd.f32 %v2264_v52, %v2271_v3 }
 0x75c   :  { %v668_v34 = vpop.f32.mrb[24].mxu0 }
 0x75d   :  { %v669_v35 = vadd.f32 %v668_v34, %v559_v30  ;;  %v1948_v36 = vpop.f32.mrb[25].mxu0 }
 0x75e   :  { %v671_v37 = vpop.f32.mrb[26].mxu0 }
 0x75f   :  { %v674_v38 = vadd.f32 %v2316_v39, %v669_v35  ;;  %v1949_v40 = vpop.f32.mrb[27].mxu0 }
 0x761   :  { %2080 = vtanh.f32 %v674_v38 }
 0x764   :  { %v777_v42 = vpop.f32.mrb[28].mxu0 }
 0x765   :  { %v783_v43 = vadd.f32 %v777_v42, %v298_v41  ;;  %v1960_v44 = vpop.f32.mrb[29].mxu0 }
 0x766   :  { %v780_v45 = vpop.f32.mrb[30].mxu0 }
 0x767   :  { %2082 = vtanh.f32 %v783_v43  ;;  %v1961_v46 = vpop.f32.mrb[31].mxu0 }
 0x76b   :  { %v2081_v47 = vpop.eup %2080 }
 0x76c   :  { %v676_v48 = vmul.f32 0.5, %v2081_v47 }
 0x76e   :  { %v677_v49 = vadd.f32 0.5, %v676_v48 }
 0x770   :  { %v678_v50 = vsel %vm2273_vm7, %v2081_v47, %v677_v49 }
 0x771   :  { %v2083_v51 = vpop.eup %2082  ;;  %681 = vrot.lane.b32.xlu0 %v678_v50, %s2154_s0  ;;  %v679_v60 = vmul.f32 %v678_v50, %v2330_v13 }
 0x772   :  { %v785_v53 = vmul.f32 0.5, %v2083_v51 }
 0x774   :  { %v786_v54 = vadd.f32 0.5, %v785_v53 }
 0x776   :  { %v787_v61 = vsel %vm2273_vm7, %v2083_v51, %v786_v54 }
 0x777   :  { %790 = vrot.lane.b32.xlu1 %v787_v61, %s2154_s0  ;;  %v788_v63 = vmul.f32 %v787_v61, %v2334_v17 }
 0x7e3   :  { %v682_v55 = vpop.permute.xlu0 %681 }
 0x7e4   :  { %v684_v56 = vmul.f32 %v682_v55, %v678_v50 }
 0x7e6   :  { %686 = vrot.lane.b32.xlu0 %v684_v56, %s2155_s8 }
 0x7e9   :  { %v791_v57 = vpop.permute.xlu1 %790 }
 0x7ea   :  { %v793_v58 = vmul.f32 %v791_v57, %v787_v61 }
 0x7ec   :  { %795 = vrot.lane.b32.xlu1 %v793_v58, %s2155_s8 }
 0x858   :  { %v687_v62 = vpop.permute.xlu0 %686 }
 0x859   :  { %v2368_v59 = vadd.f32 %v687_v62, %v679_v60 }
 0x85b   :  { %2084 = vtanh.f32 %v2368_v59 }
 0x85e   :  { %v796_v2 = vpop.permute.xlu1 %795 }
 0x85f   :  { %v2372_v5 = vadd.f32 %v796_v2, %v788_v63 }
 0x861   :  { %2086 = vtanh.f32 %v2372_v5 }
 0x865   :  { %v2085_v6 = vpop.eup %2084 }
 0x866   :  { %692 = vrot.lane.b32.xlu0 %v2085_v6, %s2156_s9 }
 0x86b   :  { %v2087_v8 = vpop.eup %2086 }
 0x86c   :  { %801 = vrot.lane.b32.xlu1 %v2087_v8, %s2156_s9 }
 0x8d8   :  { %v693_v10 = vpop.permute.xlu0 %692 }
 0x8d9   :  { %v695_v12 = vmul.f32 %v693_v10, %v678_v50 }
 0x8db   :  { %v696_v13 = vpack.c.bf16 %v695_v12, %v695_v12 }
 0x8dd   :  { %698 = vrot.lane.b32.xlu0 %v696_v13, %s2157_s10 }
 0x8de   :  { %v802_v15 = vpop.permute.xlu1 %801 }
 0x8df   :  { %v804_v16 = vmul.f32 %v802_v15, %v787_v61 }
 0x8e1   :  { %v805_v18 = vpack.c.bf16 %v804_v16, %v804_v16 }
 0x8e3   :  { %807 = vrot.lane.b32.xlu1 %v805_v18, %s2157_s10 }
 0x94f   :  { %v699_v17 = vpop.permute.xlu0 %698 }
 0x950   :  { %1953 = vmatmul.mubr.msk.bf16.vlgmr.msra.gmra.mrb[28].mxu1 %vm327_vm3, %v699_v17 }
 0x951   :  { %1963 = vmatpush3.bf16.msra.mxu1 %v2294_v29  ;;  %1964 = vmatprep.mubr.msk.bf16.mxu1 %vm2152_vm0, %v2153_v1 }
 0x952   :  { %1974 = vmatprep.subr.bf16.mxu1 %v2153_v1 }
 0x955   :  { %v808_v19 = vpop.permute.xlu1 %807 }
 0x958   :  { %1965 = vmatmul.mubr.msk.bf16.vlgmr.msra.gmra.mrb[32].mxu1 %vm327_vm3, %v808_v19 }
 0x959   :  { %1975 = vmatpush3.bf16.msra.mxu1 %v2195_v9  ;;  %1976 = vmatprep.mubr.msk.bf16.mxu1 %vm2152_vm0, %v2153_v1 }
 0x95a   :  { %1986 = vmatprep.subr.bf16.mxu1 %v2153_v1 }
 0x960   :  { %1977 = vmatmul.mubr.msk.bf16.vlgmr.msra.gmra.mrb[36].mxu1 %vm327_vm3, %v808_v19 }
 0x961   :  { %1987 = vmatpush3.bf16.msra.mxu1 %v2291_v25  ;;  %1988 = vmatprep.mubr.msk.bf16.mxu1 %vm2152_vm0, %v2153_v1 }
 0x962   :  { %1998 = vmatprep.subr.bf16.mxu1 %v2153_v1 }
 0xa23   :  { %v737_v20 = vpop.f32.mrb[28].mxu1 }
 0xa24   :  { %v1954_v22 = vpop.f32.mrb[29].mxu1 }
 0xa25   :  { %v740_v23 = vpop.f32.mrb[30].mxu1  ;;  %v308_v22 = vadd.f32 %v2264_v52, %v2277_v7 }
 0xa26   :  { %v1955_v24 = vpop.f32.mrb[31].mxu1 }
 0xa2b   :  { %v846_v26 = vpop.f32.mrb[32].mxu1 }
 0xa2c   :  { %v847_v27 = vadd.f32 %v846_v26, %v737_v20  ;;  %v1966_v21 = vpop.f32.mrb[33].mxu1 }
 0xa2d   :  { %v849_v28 = vpop.f32.mrb[34].mxu1 }
 0xa2e   :  { %v852_v30 = vadd.f32 %v2316_v39, %v847_v27  ;;  %v1967_v31 = vpop.f32.mrb[35].mxu1 }
 0xa30   :  { %2088 = vtanh.f32 %v852_v30 }
 0xa33   :  { %v955_v33 = vpop.f32.mrb[36].mxu1 }
 0xa34   :  { %v961_v34 = vadd.f32 %v955_v33, %v303_v32  ;;  %v1978_v35 = vpop.f32.mrb[37].mxu1 }
 0xa35   :  { %v958_v36 = vpop.f32.mrb[38].mxu1 }
 0xa36   :  { %2090 = vtanh.f32 %v961_v34  ;;  %v1979_v37 = vpop.f32.mrb[39].mxu1 }
 0xa3a   :  { %v2089_v38 = vpop.eup %2088 }
 0xa3b   :  { %v854_v40 = vmul.f32 0.5, %v2089_v38 }
 0xa3d   :  { %v855_v41 = vadd.f32 0.5, %v854_v40 }
 0xa3f   :  { %v856_v42 = vsel %vm2273_vm7, %v2089_v38, %v855_v41 }
 0xa40   :  { %v2091_v43 = vpop.eup %2090  ;;  %859 = vrot.lane.b32.xlu0 %v856_v42, %s2154_s0  ;;  %v857_v50 = vmul.f32 %v856_v42, %v2368_v59 }
 0xa41   :  { %v963_v44 = vmul.f32 0.5, %v2091_v43 }
 0xa43   :  { %v964_v45 = vadd.f32 0.5, %v963_v44 }
 0xa45   :  { %v965_v3 = vsel %vm2273_vm7, %v2091_v43, %v964_v45 }
 0xa46   :  { %968 = vrot.lane.b32.xlu1 %v965_v3, %s2154_s0  ;;  %v966_v54 = vmul.f32 %v965_v3, %v2372_v5 }
 0xab2   :  { %v860_v46 = vpop.permute.xlu0 %859 }
 0xab3   :  { %v862_v47 = vmul.f32 %v860_v46, %v856_v42 }
 0xab5   :  { %864 = vrot.lane.b32.xlu0 %v862_v47, %s2155_s8 }
 0xab8   :  { %v969_v48 = vpop.permute.xlu1 %968 }
 0xab9   :  { %v971_v49 = vmul.f32 %v969_v48, %v965_v3 }
 0xabb   :  { %973 = vrot.lane.b32.xlu1 %v971_v49, %s2155_s8 }
 0xb27   :  { %v865_v51 = vpop.permute.xlu0 %864 }
 0xb28   :  { %v2406_v53 = vadd.f32 %v865_v51, %v857_v50 }
 0xb2a   :  { %2092 = vtanh.f32 %v2406_v53 }
 0xb2d   :  { %v974_v61 = vpop.permute.xlu1 %973 }
 0xb2e   :  { %v2410_v55 = vadd.f32 %v974_v61, %v966_v54 }
 0xb30   :  { %2094 = vtanh.f32 %v2410_v55 }
 0xb34   :  { %v2093_v56 = vpop.eup %2092 }
 0xb35   :  { %870 = vrot.lane.b32.xlu0 %v2093_v56, %s2156_s9 }
 0xb3a   :  { %v2095_v57 = vpop.eup %2094 }
 0xb3b   :  { %979 = vrot.lane.b32.xlu1 %v2095_v57, %s2156_s9 }
 0xba7   :  { %v871_v58 = vpop.permute.xlu0 %870 }
 0xba8   :  { %v873_v60 = vmul.f32 %v871_v58, %v856_v42 }
 0xbaa   :  { %v874_v62 = vpack.c.bf16 %v873_v60, %v873_v60 }
 0xbac   :  { %876 = vrot.lane.b32.xlu0 %v874_v62, %s2157_s10 }
 0xbad   :  { %v980_v59 = vpop.permute.xlu1 %979 }
 0xbae   :  { %v982_v63 = vmul.f32 %v980_v59, %v965_v3 }
 0xbb0   :  { %v983_v2 = vpack.c.bf16 %v982_v63, %v982_v63 }
 0xbb2   :  { %985 = vrot.lane.b32.xlu1 %v983_v2, %s2157_s10 }
 0xc1e   :  { %v877_v5 = vpop.permute.xlu0 %876 }
 0xc1f   :  { %1971 = vmatmul.mubr.msk.bf16.vlgmr.msra.gmra.mrb[32].mxu0 %vm327_vm3, %v877_v5 }
 0xc20   :  { %1981 = vmatpush3.bf16.msra.mxu0 %v2294_v29  ;;  %1982 = vmatprep.mubr.msk.bf16.mxu0 %vm2152_vm0, %v2153_v1 }
 0xc21   :  { %1992 = vmatprep.subr.bf16.mxu0 %v2153_v1 }
 0xc24   :  { %v986_v6 = vpop.permute.xlu1 %985 }
 0xc27   :  { %1983 = vmatmul.mubr.msk.bf16.vlgmr.msra.gmra.mrb[36].mxu0 %vm327_vm3, %v986_v6 }
 0xc28   :  { %1993 = vmatpush3.bf16.msra.mxu0 %v2195_v9  ;;  %1994 = vmatprep.mubr.msk.bf16.mxu0 %vm2152_vm0, %v2153_v1 }
 0xc29   :  { %2004 = vmatprep.subr.bf16.mxu0 %v2153_v1 }
 0xc2f   :  { %1995 = vmatmul.mubr.msk.bf16.vlgmr.msra.gmra.mrb[40].mxu0 %vm327_vm3, %v986_v6 }
 0xc30   :  { %2005 = vmatpush3.bf16.msra.mxu0 %v2291_v25  ;;  %2006 = vmatprep.mubr.msk.bf16.mxu0 %vm2152_vm0, %v2153_v1 }
 0xc31   :  { %2016 = vmatprep.subr.bf16.mxu0 %v2153_v1 }
 0xcf2   :  { %v915_v8 = vpop.f32.mrb[32].mxu0 }
 0xcf3   :  { %v1972_v10 = vpop.f32.mrb[33].mxu0 }
 0xcf4   :  { %v918_v12 = vpop.f32.mrb[34].mxu0 }
 0xcf5   :  { %v1973_v13 = vpop.f32.mrb[35].mxu0 }
 0xcfa   :  { %v1024_v15 = vpop.f32.mrb[36].mxu0 }
 0xcfb   :  { %v1025_v16 = vadd.f32 %v1024_v15, %v915_v8  ;;  %v1984_v18 = vpop.f32.mrb[37].mxu0 }
 0xcfc   :  { %v1027_v17 = vpop.f32.mrb[38].mxu0 }
 0xcfd   :  { %v1030_v19 = vadd.f32 %v2316_v39, %v1025_v16  ;;  %v1985_v20 = vpop.f32.mrb[39].mxu0 }
 0xcff   :  { %2096 = vtanh.f32 %v1030_v19 }
 0xd02   :  { %v1133_v23 = vpop.f32.mrb[40].mxu0 }
 0xd03   :  { %v1139_v24 = vadd.f32 %v1133_v23, %v308_v22  ;;  %v1996_v26 = vpop.f32.mrb[41].mxu0 }
 0xd04   :  { %v1136_v27 = vpop.f32.mrb[42].mxu0 }
 0xd05   :  { %2098 = vtanh.f32 %v1139_v24  ;;  %v1997_v21 = vpop.f32.mrb[43].mxu0 }
 0xd09   :  { %v2097_v28 = vpop.eup %2096 }
 0xd0a   :  { %v1032_v30 = vmul.f32 0.5, %v2097_v28 }
 0xd0c   :  { %v1033_v31 = vadd.f32 0.5, %v1032_v30 }
 0xd0e   :  { %v1034_v32 = vsel %vm2273_vm7, %v2097_v28, %v1033_v31 }
 0xd0f   :  { %v2099_v33 = vpop.eup %2098  ;;  %1037 = vrot.lane.b32.xlu0 %v1034_v32, %s2154_s0  ;;  %v1035_v41 = vmul.f32 %v1034_v32, %v2406_v53 }
 0xd10   :  { %v1141_v34 = vmul.f32 0.5, %v2099_v33 }
 0xd12   :  { %v1142_v35 = vadd.f32 0.5, %v1141_v34 }
 0xd14   :  { %v1143_v7 = vsel %vm2273_vm7, %v2099_v33, %v1142_v35 }
 0xd15   :  { %1146 = vrot.lane.b32.xlu1 %v1143_v7, %s2154_s0  ;;  %v1144_v44 = vmul.f32 %v1143_v7, %v2410_v55 }
 0xd81   :  { %v1038_v36 = vpop.permute.xlu0 %1037 }
 0xd82   :  { %v1040_v37 = vmul.f32 %v1038_v36, %v1034_v32 }
 0xd84   :  { %1042 = vrot.lane.b32.xlu0 %v1040_v37, %s2155_s8 }
 0xd87   :  { %v1147_v38 = vpop.permute.xlu1 %1146 }
 0xd88   :  { %v1149_v40 = vmul.f32 %v1147_v38, %v1143_v7 }
 0xd8a   :  { %1151 = vrot.lane.b32.xlu1 %v1149_v40, %s2155_s8 }
 0xdf6   :  { %v1043_v42 = vpop.permute.xlu0 %1042 }
 0xdf7   :  { %v2444_v43 = vadd.f32 %v1043_v42, %v1035_v41 }
 0xdf9   :  { %2100 = vtanh.f32 %v2444_v43 }
 0xdfc   :  { %v1152_v45 = vpop.permute.xlu1 %1151 }
 0xdfd   :  { %v2448_v3 = vadd.f32 %v1152_v45, %v1144_v44 }
 0xdff   :  { %2102 = vtanh.f32 %v2448_v3 }
 0xe03   :  { %v2101_v46 = vpop.eup %2100 }
 0xe04   :  { %1048 = vrot.lane.b32.xlu0 %v2101_v46, %s2156_s9 }
 0xe09   :  { %v2103_v47 = vpop.eup %2102 }
 0xe0a   :  { %1157 = vrot.lane.b32.xlu1 %v2103_v47, %s2156_s9 }
 0xe76   :  { %v1049_v48 = vpop.permute.xlu0 %1048 }
 0xe77   :  { %v1051_v49 = vmul.f32 %v1049_v48, %v1034_v32 }
 0xe79   :  { %v1052_v50 = vpack.c.bf16 %v1051_v49, %v1051_v49 }
 0xe7b   :  { %1054 = vrot.lane.b32.xlu0 %v1052_v50, %s2157_s10 }
 0xe7c   :  { %v1158_v51 = vpop.permute.xlu1 %1157 }
 0xe7d   :  { %v1160_v53 = vmul.f32 %v1158_v51, %v1143_v7 }
 0xe7f   :  { %v1161_v54 = vpack.c.bf16 %v1160_v53, %v1160_v53 }
 0xe81   :  { %1163 = vrot.lane.b32.xlu1 %v1161_v54, %s2157_s10 }
 0xeed   :  { %v1055_v61 = vpop.permute.xlu0 %1054 }
 0xeee   :  { %1989 = vmatmul.mubr.msk.bf16.vlgmr.msra.gmra.mrb[40].mxu1 %vm327_vm3, %v1055_v61 }
 0xeef   :  { %1999 = vmatpush3.bf16.msra.mxu1 %v2294_v29  ;;  %2000 = vmatprep.mubr.msk.bf16.mxu1 %vm2152_vm0, %v2153_v1 }
 0xef0   :  { %2010 = vmatprep.subr.bf16.mxu1 %v2153_v1 }
 0xef3   :  { %v1164_v55 = vpop.permute.xlu1 %1163 }
 0xef6   :  { %2001 = vmatmul.mubr.msk.bf16.vlgmr.msra.gmra.mrb[44].mxu1 %vm327_vm3, %v1164_v55 }
 0xef7   :  { %2011 = vmatpush3.bf16.msra.mxu1 %v2195_v9  ;;  %2012 = vmatprep.mubr.msk.bf16.mxu1 %vm2152_vm0, %v2153_v1 }
 0xef8   :  { %2022 = vmatprep.subr.bf16.mxu1 %v2153_v1 }
 0xefe   :  { %2013 = vmatmul.mubr.msk.bf16.vlgmr.msra.gmra.mrb[48].mxu1 %vm327_vm3, %v1164_v55 }
 0xeff   :  { %2023 = vmatpush3.bf16.msra.mxu1 %v2291_v25  ;;  %2024 = vmatprep.mubr.msk.bf16.mxu1 %vm2152_vm0, %v2153_v1  ;;  %v313_v25 = vadd.f32 %v2264_v52, %v2281_v11 }
 0xf00   :  { %2034 = vmatprep.subr.bf16.mxu1 %v2153_v1 }
 0xfc1   :  { %v1093_v56 = vpop.f32.mrb[40].mxu1 }
 0xfc2   :  { %v1990_v57 = vpop.f32.mrb[41].mxu1 }
 0xfc3   :  { %v1096_v58 = vpop.f32.mrb[42].mxu1 }
 0xfc4   :  { %v1991_v60 = vpop.f32.mrb[43].mxu1 }
 0xfc9   :  { %v1202_v62 = vpop.f32.mrb[44].mxu1 }
 0xfca   :  { %v1203_v59 = vadd.f32 %v1202_v62, %v1093_v56  ;;  %v2002_v63 = vpop.f32.mrb[45].mxu1 }
 0xfcb   :  { %v1205_v2 = vpop.f32.mrb[46].mxu1 }
 0xfcc   :  { %v1208_v5 = vadd.f32 %v2316_v39, %v1203_v59  ;;  %v2003_v6 = vpop.f32.mrb[47].mxu1 }
 0xfce   :  { %2104 = vtanh.f32 %v1208_v5 }
 0xfd1   :  { %v1311_v8 = vpop.f32.mrb[48].mxu1 }
 0xfd2   :  { %v1317_v10 = vadd.f32 %v1311_v8, %v313_v25  ;;  %v2014_v12 = vpop.f32.mrb[49].mxu1 }
 0xfd3   :  { %v1314_v13 = vpop.f32.mrb[50].mxu1 }
 0xfd4   :  { %2106 = vtanh.f32 %v1317_v10  ;;  %v2015_v15 = vpop.f32.mrb[51].mxu1 }
 0xfd8   :  { %v2105_v16 = vpop.eup %2104 }
 0xfd9   :  { %v1210_v18 = vmul.f32 0.5, %v2105_v16 }
 0xfdb   :  { %v1211_v17 = vadd.f32 0.5, %v1210_v18 }
 0xfdd   :  { %v1212_v19 = vsel %vm2273_vm7, %v2105_v16, %v1211_v17 }
 0xfde   :  { %v2107_v20 = vpop.eup %2106  ;;  %1215 = vrot.lane.b32.xlu0 %v1212_v19, %s2154_s0  ;;  %v1213_v28 = vmul.f32 %v1212_v19, %v2444_v43 }
 0xfdf   :  { %v1319_v22 = vmul.f32 0.5, %v2107_v20 }
 0xfe1   :  { %v1320_v23 = vadd.f32 0.5, %v1319_v22 }
 0xfe3   :  { %v1321_v11 = vsel %vm2273_vm7, %v2107_v20, %v1320_v23 }
 0xfe4   :  { %1324 = vrot.lane.b32.xlu1 %v1321_v11, %s2154_s0  ;;  %v1322_v32 = vmul.f32 %v1321_v11, %v2448_v3 }
0x1050   :  { %v1216_v24 = vpop.permute.xlu0 %1215 }
0x1051   :  { %v1218_v26 = vmul.f32 %v1216_v24, %v1212_v19 }
0x1053   :  { %1220 = vrot.lane.b32.xlu0 %v1218_v26, %s2155_s8 }
0x1056   :  { %v1325_v27 = vpop.permute.xlu1 %1324 }
0x1057   :  { %v1327_v21 = vmul.f32 %v1325_v27, %v1321_v11 }
0x1059   :  { %1329 = vrot.lane.b32.xlu1 %v1327_v21, %s2155_s8 }
0x10c5   :  { %v1221_v30 = vpop.permute.xlu0 %1220 }
0x10c6   :  { %v2482_v31 = vadd.f32 %v1221_v30, %v1213_v28 }
0x10c8   :  { %2108 = vtanh.f32 %v2482_v31 }
0x10cb   :  { %v1330_v33 = vpop.permute.xlu1 %1329 }
0x10cc   :  { %v2486_v34 = vadd.f32 %v1330_v33, %v1322_v32 }
0x10ce   :  { %2110 = vtanh.f32 %v2486_v34 }
0x10d2   :  { %v2109_v35 = vpop.eup %2108 }
0x10d3   :  { %1226 = vrot.lane.b32.xlu0 %v2109_v35, %s2156_s9 }
0x10d8   :  { %v2111_v7 = vpop.eup %2110 }
0x10d9   :  { %1335 = vrot.lane.b32.xlu1 %v2111_v7, %s2156_s9 }
0x1145   :  { %v1227_v36 = vpop.permute.xlu0 %1226 }
0x1146   :  { %v1229_v37 = vmul.f32 %v1227_v36, %v1212_v19 }
0x1148   :  { %v1230_v38 = vpack.c.bf16 %v1229_v37, %v1229_v37 }
0x114a   :  { %1232 = vrot.lane.b32.xlu0 %v1230_v38, %s2157_s10 }
0x114b   :  { %v1336_v40 = vpop.permute.xlu1 %1335 }
0x114c   :  { %v1338_v41 = vmul.f32 %v1336_v40, %v1321_v11 }
0x114e   :  { %v1339_v42 = vpack.c.bf16 %v1338_v41, %v1338_v41 }
0x1150   :  { %1341 = vrot.lane.b32.xlu1 %v1339_v42, %s2157_s10 }
0x11bc   :  { %v1233_v43 = vpop.permute.xlu0 %1232 }
0x11bd   :  { %2007 = vmatmul.mubr.msk.bf16.vlgmr.msra.gmra.mrb[44].mxu0 %vm327_vm3, %v1233_v43 }
0x11be   :  { %2017 = vmatpush3.bf16.msra.mxu0 %v2294_v29  ;;  %2018 = vmatprep.mubr.msk.bf16.mxu0 %vm2152_vm0, %v2153_v1 }
0x11bf   :  { %2028 = vmatprep.subr.bf16.mxu0 %v2153_v1 }
0x11c2   :  { %v1342_v44 = vpop.permute.xlu1 %1341 }
0x11c5   :  { %2019 = vmatmul.mubr.msk.bf16.vlgmr.msra.gmra.mrb[48].mxu0 %vm327_vm3, %v1342_v44 }
0x11c6   :  { %2029 = vmatpush3.bf16.msra.mxu0 %v2195_v9  ;;  %2030 = vmatprep.mubr.msk.bf16.mxu0 %vm2152_vm0, %v2153_v1 }
0x11c7   :  { %2055 = vmatprep.subr.bf16.mxu0 %v2151_v0  ;;  %v318_v0 = vadd.f32 %v2264_v52, %v2285_v14 }
0x11cd   :  { %2031 = vmatmul.mubr.msk.bf16.vlgmr.msra.gmra.mrb[52].mxu0 %vm327_vm3, %v1342_v44 }
0x11ce   :  { %2044 = vmatprep.mubr.msk.f32.mxu0 %vm2152_vm0, %v2153_v1 }
0x1290   :  { %v1271_v45 = vpop.f32.mrb[44].mxu0 }
0x1291   :  { %v2008_v3 = vpop.f32.mrb[45].mxu0 }
0x1292   :  { %v1274_v46 = vpop.f32.mrb[46].mxu0 }
0x1293   :  { %v2009_v47 = vpop.f32.mrb[47].mxu0  ;;  %v42_v46 = vld [vmem:[#allocation2 + $0x88] sm:$0xff] }
0x1298   :  { %v1380_v48 = vpop.f32.mrb[48].mxu0 }
0x1299   :  { %v1381_v49 = vadd.f32 %v1380_v48, %v1271_v45  ;;  %v2020_v50 = vpop.f32.mrb[49].mxu0 }
0x129a   :  { %v1383_v51 = vpop.f32.mrb[50].mxu0 }
0x129b   :  { %v1386_v9 = vadd.f32 %v2316_v39, %v1381_v49  ;;  %v2021_v53 = vpop.f32.mrb[51].mxu0  ;;  %v45_v51 = vld [vmem:[#allocation2 + $0xa0] sm:$0x3f] }
0x129d   :  { %2112 = vtanh.f32 %v1386_v9  ;;  %v1794_v9 = vld [vmem:[#allocation2 + $0x98] ss:$0 sm:$0xff] }
0x12a0   :  { %v1489_v54 = vpop.f32.mrb[52].mxu0 }
0x12a1   :  { %v1495_v61 = vadd.f32 %v1489_v54, %v318_v0  ;;  %v2032_v55 = vpop.f32.mrb[53].mxu0 }
0x12a2   :  { %v1492_v56 = vpop.f32.mrb[54].mxu0  ;;  %v1796_v55 = vld [vmem:[#allocation2 + $0xa8] ss:$0 sm:$0xff] }
0x12a3   :  { %2114 = vtanh.f32 %v1495_v61  ;;  %v2033_v57 = vpop.f32.mrb[55].mxu0 }
0x12a7   :  { %v2113_v58 = vpop.eup %2112 }
0x12a8   :  { %v1388_v60 = vmul.f32 0.5, %v2113_v58 }
0x12aa   :  { %v1389_v62 = vadd.f32 0.5, %v1388_v60 }
0x12ac   :  { %v1390_v59 = vsel %vm2273_vm7, %v2113_v58, %v1389_v62 }
0x12ad   :  { %v2115_v63 = vpop.eup %2114  ;;  %1393 = vrot.lane.b32.xlu0 %v1390_v59, %s2154_s0  ;;  %v1391_v10 = vmul.f32 %v1390_v59, %v2482_v31 }
0x12ae   :  { %v1497_v2 = vmul.f32 0.5, %v2115_v63 }
0x12b0   :  { %v1498_v5 = vadd.f32 0.5, %v1497_v2 }
0x12b2   :  { %v1499_v52 = vsel %vm2273_vm7, %v2115_v63, %v1498_v5 }
0x12b3   :  { %1502 = vrot.lane.b32.xlu1 %v1499_v52, %s2154_s0  ;;  %v1500_v15 = vmul.f32 %v1499_v52, %v2486_v34 }
0x131f   :  { %v1394_v14 = vpop.permute.xlu0 %1393 }
0x1320   :  { %v1396_v6 = vmul.f32 %v1394_v14, %v1390_v59 }
0x1322   :  { %1398 = vrot.lane.b32.xlu0 %v1396_v6, %s2155_s8 }
0x1325   :  { %v1503_v25 = vpop.permute.xlu1 %1502 }
0x1326   :  { %v1505_v8 = vmul.f32 %v1503_v25, %v1499_v52 }
0x1328   :  { %1507 = vrot.lane.b32.xlu1 %v1505_v8, %s2155_s8 }
0x1394   :  { %v1399_v12 = vpop.permute.xlu0 %1398 }
0x1395   :  { %v1401_v13 = vadd.f32 %v1399_v12, %v1391_v10 }
0x1397   :  { %2116 = vtanh.f32 %v1401_v13 }
0x139a   :  { %v1508_v16 = vpop.permute.xlu1 %1507 }
0x139b   :  { %v1510_v18 = vadd.f32 %v1508_v16, %v1500_v15 }
0x139d   :  { %2118 = vtanh.f32 %v1510_v18 }
0x13a1   :  { %v2117_v17 = vpop.eup %2116 }
0x13a2   :  { %1404 = vrot.lane.b32.xlu0 %v2117_v17, %s2156_s9 }
0x13a7   :  { %v2119_v19 = vpop.eup %2118 }
0x13a8   :  { %1513 = vrot.lane.b32.xlu1 %v2119_v19, %s2156_s9 }
0x1414   :  { %v1405_v20 = vpop.permute.xlu0 %1404 }
0x1415   :  { %v1407_v22 = vmul.f32 %v1405_v20, %v1390_v59 }
0x1417   :  { %v1408_v23 = vpack.c.bf16 %v1407_v22, %v1407_v22 }
0x1419   :  { %1410 = vrot.lane.b32.xlu0 %v1408_v23, %s2157_s10 }
0x141a   :  { %v1514_v11 = vpop.permute.xlu1 %1513 }
0x141b   :  { %v1516_v24 = vmul.f32 %v1514_v11, %v1499_v52 }
0x141d   :  { %v1517_v26 = vpack.c.bf16 %v1516_v24, %v1516_v24 }
0x141f   :  { %1519 = vrot.lane.b32.xlu1 %v1517_v26, %s2157_s10 }
0x148b   :  { %v1411_v27 = vpop.permute.xlu0 %1410 }
0x148c   :  { %2025 = vmatmul.mubr.msk.bf16.vlgmr.msra.gmra.mrb[52].mxu1 %vm327_vm3, %v1411_v27 }
0x148d   :  { %2035 = vmatpush3.bf16.msra.mxu1 %v2294_v29  ;;  %2036 = vmatprep.mubr.msk.bf16.mxu1 %vm2152_vm0, %v2153_v1 }
0x1491   :  { %v1520_v21 = vpop.permute.xlu1 %1519 }
0x1494   :  { %2037 = vmatmul.mubr.msk.bf16.vlgmr.msra.gmra.mrb[56].mxu1 %vm327_vm3, %v1520_v21 }
0x155f   :  { %v1449_v28 = vpop.f32.mrb[52].mxu1 }
0x1560   :  { %v2026_v30 = vpop.f32.mrb[53].mxu1 }
0x1561   :  { %v1452_v31 = vpop.f32.mrb[54].mxu1 }
0x1562   :  { %v2027_v32 = vpop.f32.mrb[55].mxu1 }
0x1567   :  { %v1558_v33 = vpop.f32.mrb[56].mxu1 }
0x1568   :  { %v1559_v34 = vadd.f32 %v1558_v33, %v1449_v28  ;;  %v2038_v35 = vpop.f32.mrb[57].mxu1 }
0x1569   :  { %v1561_v7 = vpop.f32.mrb[58].mxu1 }
0x156a   :  { %v1564_v36 = vadd.f32 %v2316_v39, %v1559_v34  ;;  %v2039_v37 = vpop.f32.mrb[59].mxu1  ;;  %v43_v39 = vld [vmem:[#allocation2 + $0x90] sm:$0xff] }
0x156b   :  { %v2056_v47 = vpack.c.bf16 %v43_v39, %v42_v46 }
0x156c   :  { %2120 = vtanh.f32 %v1564_v36 }
0x156d   :  { %2057 = vmatpush3.bf16.msra.mxu0 %v2056_v47 }
0x156e   :  { %2047 = vmatprep.subr.mxu0 %v2153_v1 }
0x1576   :  { %v2121_v38 = vpop.eup %2120 }
0x1577   :  { %v1566_v29 = vmul.f32 0.5, %v2121_v38 }
0x1579   :  { %v1567_v40 = vadd.f32 0.5, %v1566_v29 }
0x157b   :  { %v1568_v41 = vsel %vm2273_vm7, %v2121_v38, %v1567_v40 }
0x157c   :  { %1571 = vrot.lane.b32.xlu0 %v1568_v41, %s2154_s0  ;;  %v1569_v44 = vmul.f32 %v1568_v41, %v1401_v13 }
0x15ee   :  { %v1572_v42 = vpop.permute.xlu0 %1571 }
0x15ef   :  { %v1574_v43 = vmul.f32 %v1572_v42, %v1568_v41 }
0x15f1   :  { %1576 = vrot.lane.b32.xlu1 %v1574_v43, %s2155_s8 }
0x1663   :  { %v1577_v45 = vpop.permute.xlu1 %1576 }
0x1664   :  { %v1579_v3 = vadd.f32 %v1577_v45, %v1569_v44 }
0x1666   :  { %2122 = vtanh.f32 %v1579_v3 }
0x1670   :  { %v2123_v48 = vpop.eup %2122 }
0x1671   :  { %1582 = vrot.lane.b32.xlu0 %v2123_v48, %s2156_s9 }
0x16e3   :  { %v1583_v4 = vpop.permute.xlu0 %1582 }
0x16e4   :  { %v1585_v49 = vmul.f32 %v1583_v4, %v1568_v41 }
0x16e6   :  { %1591 = vrot.lane.b32.xlu1 %v1585_v49, %s2157_s10 }
0x1758   :  { %v1592_v50 = vpop.permute.xlu1 %1591 }
0x1759   :  { %2045 = vmatmul.mubr.msk.f32.vlgmr.msra.gmra.mrb[14].mxu0 %vm327_vm3, %v1592_v50 }
0x175a   :  { %2049 = vmatprep.mubr.msk.f32.mxu0 %vm2152_vm0, %v2153_v1  ;;  %2048 = vmatpush3.msk.msra.mxu0 %vm1674_vm8, %v45_v51 }
0x182c   :  { %v1661_v53 = vpop.f32.mrb[14].mxu0 }
0x182d   :  { %v1662_v0 = vadd.f32 %v1794_v9, %v1661_v53  ;;  %v2046_v54 = vpop.f32.mrb[15].mxu0 }
0x182f   :  { %v1665_v61 = vmax.f32 %v1662_v0, 0.0 }
0x1831   :  { %2050 = vmatmul.mubr.msk.f32.vlgmr.msra.gmra.mrb[56].mxu0 %vm1670_vm9, %v1665_v61 }
0x1904   :  { %v1744_v56 = vpop.f32.mrb[56].mxu0 }
0x1905   :  { %v1745_v57 = vadd.f32 %v1796_v55, %v1744_v56  ;;  %v2051_v58 = vpop.f32.mrb[57].mxu0 }
0x1907   :  { %1749 = vst.msk [vmem:[%s2544_s2] sm:$0xff] %vm1748_vm10, %v1745_v57 }
0x1908   :  { %1754 = vsyncpa [#allocation3], 1 }

</bundles_post_ra>
